<compile_context>
chip_gen: v5e
topology: v5e:2x2
jax: 0.10.0
libtpu: 0.0.40
codegen_flags: <defaults>
</compile_context>

<pallas_src>
import functools

import jax
import jax.numpy as jnp
import numpy as np
from jax import lax
from jax.experimental import pallas as pl
from jax.experimental.pallas import tpu as pltpu


def temporal_block_kernel(x_ref, w1_ref, b1_ref, w2_ref, b2_ref, *rest,
                          K, dilation, padding, L, has_downsample):
    """One batch block per grid step.

    x_ref  : (C_in,  Nb*L)    f32  activation slab (channels x batch*time)
    w1_ref : (K, C_out, C_in) bf16 per-tap conv1 weights
    b1_ref : (C_out, 1)       f32
    w2_ref : (K, C_out, C_out) bf16 per-tap conv2 weights
    b2_ref : (C_out, 1)       f32
    wd_ref : (C_out, C_in) bf16, bd_ref: (C_out, 1) f32   (optional 1x1 conv)
    o_ref  : (C_out, Nb*L)    bf16 output slab
    """
    if has_downsample:
        wd_ref, bd_ref, o_ref = rest
    else:
        (o_ref,) = rest

    f32, bf16 = jnp.float32, jnp.bfloat16
    nbl = x_ref.shape[-1]
    x = x_ref[...]                                    # (C_in, Nb*L) f32

    # Temporal shift of each dilated tap relative to the output position.
    shifts = [t * dilation - padding for t in range(K)]

    # Per-shift 0/1 lane masks, computed once and reused by conv1 and conv2:
    # a shifted read is valid only if it stays inside the same L-lane batch
    # segment; outside-of-segment lanes are exactly the conv's zero padding.
    masks = {}
    if any(s != 0 for s in shifts):
        pos = lax.broadcasted_iota(jnp.int32, (1, nbl), 1) % L
        for s in shifts:
            if s == 0:
                continue
            keep = (pos < (L - s)) if s > 0 else (pos >= (-s))
            masks[s] = keep.astype(f32)

    def shifted(a, s):
        """a'[:, i] = a[:, i + s] within each L-lane segment, 0 outside."""
        if s == 0:
            return a
        # Lane rotation on the XLU; wrapped / cross-segment lanes are zeroed
        # by the mask (they correspond to the conv zero padding).
        r = pltpu.roll(a, (-s) % nbl, axis=1)
        return r * masks[s]

    def dilated_conv(a, w_ref, b):
        """sum_k w[k] @ shift_k(a): K lane-wide MXU matmuls, f32 accumulation."""
        acc = b                                       # (C_out, 1) broadcasts
        for k, s in enumerate(shifts):
            acc = acc + jnp.dot(w_ref[k], shifted(a, s).astype(bf16),
                                preferred_element_type=f32)
        return acc

    # ---- conv1 -> ReLU   (dropout1 == identity: eval mode) -----------------
    h = jnp.maximum(dilated_conv(x, w1_ref, b1_ref[...]), 0.0)
    # TODO(synk): training-mode dropout (stateful PRNG masking) not implemented.

    # ---- conv2 -> ReLU   (dropout2 == identity: eval mode) -----------------
    out = jnp.maximum(dilated_conv(h, w2_ref, b2_ref[...]), 0.0)

    # ---- residual path ------------------------------------------------------
    if has_downsample:
        # 1x1 conv, batched over all Nb*L lanes in a single matmul.
        res = jnp.dot(wd_ref[...], x.astype(bf16),
                      preferred_element_type=f32) + bd_ref[...]
        # TODO(synk): could fold wd into the zero-shift tap of w1 (stacked
        # output rows, split after the matmul) to save one small matmul/step.
    else:
        res = x                                       # f32 skip, no bf16 rounding

    o_ref[...] = jnp.maximum(out + res, 0.0).astype(o_ref.dtype)


def weight_norm_effective(v, g):
    """PyTorch weight_norm (dim=0): w = g * v / ||v||, norm over all dims but 0."""
    v = v.astype(jnp.float32)
    norm = jnp.sqrt(jnp.sum(v * v, axis=(1, 2), keepdims=True))
    return g.reshape(-1, 1, 1).astype(jnp.float32) * v / norm


def _vmem_limit_bytes():
    """Scoped-VMEM limit: ~75% of physical (v7x ~48 MiB, v5e/v6e ~96 MiB)."""
    try:
        cap = int(getattr(pltpu.get_tpu_info(), "vmem_capacity_bytes",
                          64 * 1024 * 1024))
    except Exception:
        cap = 64 * 1024 * 1024
    return int(min(cap * 3 // 4, 100 * 1024 * 1024))


def _pick_batch_block(N, L, C_in, C_out, requested, vmem_budget_bytes):
    """Largest batch block that divides N, keeps 128-lane-aligned blocks, fits
    the VMEM budget, and leaves >= 2 grid steps (both v7x TensorCores work)."""
    # Rough per-batch-element bytes per step: double-buffered in/out blocks
    # plus live f32 intermediates (shifted taps, h, accumulators, residual).
    per_elem = L * (2 * 4 * C_in + 2 * 2 * C_out + 4 * (2 * C_in + 4 * C_out))
    cap = max(1, vmem_budget_bytes // max(1, per_elem))
    if requested is not None:
        cap = min(cap, requested)
    cap = min(cap, max(1, N // 2))
    for nb in range(min(cap, N), 0, -1):
        if N % nb == 0 and (nb * L) % 128 == 0:
            return nb
    return N  # single full-array block (block dim == full dim is allowed)


def temporal_block_forward(x, params, *, kernel_size, stride, dilation,
                           padding, batch_block=None, out_dtype=jnp.bfloat16):
    """Fused TemporalBlock forward (eval mode). x: (N, C_in, L) -> (N, C_out, L)."""
    assert stride == 1, "residual add requires stride == 1"
    N, C_in, L = x.shape
    K = kernel_size
    # This PyTorch block (no Chomp1d) adds x to the conv-stack output, so the
    # conv output length must equal L: 2*padding == dilation*(K-1).
    assert 2 * padding == dilation * (K - 1), \
        "conv output length must equal input length for the residual add"

    w1 = weight_norm_effective(params["v1"], params["g1"])   # (C_out, C_in, K)
    w2 = weight_norm_effective(params["v2"], params["g2"])   # (C_out, C_out, K)
    C_out = w1.shape[0]
    has_downsample = C_in != C_out

    # Per-tap weights (K, C_out, C): one bf16 MXU operand per dilated tap.
    w1_t = jnp.transpose(w1, (2, 0, 1)).astype(jnp.bfloat16)
    w2_t = jnp.transpose(w2, (2, 0, 1)).astype(jnp.bfloat16)
    b1 = params["b1"].reshape(C_out, 1).astype(jnp.float32)
    b2 = params["b2"].reshape(C_out, 1).astype(jnp.float32)

    weight_args = [w1_t, b1, w2_t, b2]
    if has_downsample:
        weight_args += [params["wd"].reshape(C_out, C_in).astype(jnp.bfloat16),
                        params["bd"].reshape(C_out, 1).astype(jnp.float32)]

    # Channels-on-sublanes, batch*time-on-lanes slab.  One XLA transpose each
    # way; inside the kernel every block is then lane-dense and every matmul
    # is batched across Nb*L lanes.  x stays f32 (cast to bf16 in-kernel).
    xl = jnp.transpose(x.astype(jnp.float32), (1, 0, 2)).reshape(C_in, N * L)

    vmem_limit = _vmem_limit_bytes()
    Nb = _pick_batch_block(N, L, C_in, C_out, batch_block, vmem_limit // 2)
    # TODO(synk): for large C_out*L configs add a temporal (L) grid axis so the
    # f32 accumulators / out blocks stay tiled (matters most on v7x, 64 MiB).

    kernel = functools.partial(
        temporal_block_kernel, K=K, dilation=dilation, padding=padding, L=L,
        has_downsample=has_downsample)

    def call(single_buffer_weights):
        if single_buffer_weights:
            # Whole-array VMEM residents: one copy, no per-step double buffer.
            wspecs = [pl.BlockSpec(memory_space=pltpu.MemorySpace.VMEM)
                      for _ in weight_args]
        else:
            wspecs = [pl.BlockSpec(a.shape, lambda n, nd=a.ndim: (0,) * nd)
                      for a in weight_args]
        return pl.pallas_call(
            kernel,
            out_shape=jax.ShapeDtypeStruct((C_out, N * L), out_dtype),
            grid_spec=pltpu.PrefetchScalarGridSpec(
                num_scalar_prefetch=0,
                grid=(N // Nb,),
                in_specs=[pl.BlockSpec((C_in, Nb * L), lambda n: (0, n))]
                         + wspecs,
                out_specs=pl.BlockSpec((C_out, Nb * L), lambda n: (0, n)),
            ),
            compiler_params=pltpu.CompilerParams(
                dimension_semantics=("parallel",),
                vmem_limit_bytes=vmem_limit),
        )(xl, *weight_args)

    try:
        yl = call(single_buffer_weights=True)
    except Exception:
        # Portability fallback: if this Pallas version rejects whole-array
        # VMEM operands next to a blocked grid, use constant-index blocked
        # (double-buffered) weight specs instead.
        yl = call(single_buffer_weights=False)

    return jnp.transpose(yl.reshape(C_out, N, L), (1, 0, 2))   # (N, C_out, L)


def reference_forward(x, params, *, kernel_size, stride, dilation, padding):
    """Pure-JAX f32 reference of TemporalBlock.forward (eval mode)."""
    def conv1d(inp, w, b, dil, pad):
        y = lax.conv_general_dilated(
            inp, w, window_strides=(stride,), padding=[(pad, pad)],
            rhs_dilation=(dil,), dimension_numbers=("NCH", "OIH", "NCH"),
            precision=lax.Precision.HIGHEST)
        return y + b[None, :, None]

    w1 = weight_norm_effective(params["v1"], params["g1"])
    w2 = weight_norm_effective(params["v2"], params["g2"])
    h = jax.nn.relu(conv1d(x, w1, params["b1"], dilation, padding))
    out = jax.nn.relu(conv1d(h, w2, params["b2"], dilation, padding))
    if x.shape[1] != w1.shape[0]:
        res = conv1d(x, params["wd"], params["bd"], 1, 0)
    else:
        res = x
    return jax.nn.relu(out + res)


def init_params(key, n_inputs, n_outputs, kernel_size):
    ks = jax.random.split(key, 6)
    v1 = 0.01 * jax.random.normal(ks[0], (n_outputs, n_inputs, kernel_size), jnp.float32)
    v2 = 0.01 * jax.random.normal(ks[1], (n_outputs, n_outputs, kernel_size), jnp.float32)
    # weight_norm init: g = ||v|| per output channel  => effective weight == v
    g1 = jnp.sqrt(jnp.sum(v1 ** 2, axis=(1, 2)))
    g2 = jnp.sqrt(jnp.sum(v2 ** 2, axis=(1, 2)))
    b1 = 0.05 * jax.random.normal(ks[2], (n_outputs,), jnp.float32)
    b2 = 0.05 * jax.random.normal(ks[3], (n_outputs,), jnp.float32)
    params = dict(v1=v1, g1=g1, b1=b1, v2=v2, g2=g2, b2=b2)
    if n_inputs != n_outputs:
        params["wd"] = 0.01 * jax.random.normal(ks[4], (n_outputs, n_inputs, 1), jnp.float32)
        params["bd"] = 0.05 * jax.random.normal(ks[5], (n_outputs,), jnp.float32)
    return params


if __name__ == "__main__":
    # Small TPU-friendly demo: lane-dense L (multiple of 128) and a batch that
    # splits into two parallel grid steps (feeds both v7x TensorCores).
    N, C_IN, C_OUT, L = 8, 4, 8, 128
    K, STRIDE, DILATION, PADDING = 3, 1, 1, 1

    key = jax.random.PRNGKey(0)
    k_x, k_p = jax.random.split(key)
    x = jax.random.normal(k_x, (N, C_IN, L), jnp.float32)
    params = init_params(k_p, C_IN, C_OUT, K)

    out = temporal_block_forward(
        x, params, kernel_size=K, stride=STRIDE, dilation=DILATION,
        padding=PADDING)
    out = jax.block_until_ready(out)

    ref = reference_forward(
        x, params, kernel_size=K, stride=STRIDE, dilation=DILATION,
        padding=PADDING)
    # bf16 matmul operands + bf16 output vs the f32 reference.
    np.testing.assert_allclose(np.asarray(out.astype(jnp.float32)),
                               np.asarray(ref), rtol=2e-2, atol=2e-2)

    print("KERNEL_OK")
</pallas_src>

<mosaic_0001>
module attributes {stable_mosaic.version = 11 : i64} {
  func.func @temporal_block_kernel(%arg0: i32, %arg1: memref<4x512xf32, #tpu.memory_space<vmem>>, %arg2: memref<3x8x4xbf16, #tpu.memory_space<vmem>>, %arg3: memref<8x1xf32, #tpu.memory_space<vmem>>, %arg4: memref<3x8x8xbf16, #tpu.memory_space<vmem>>, %arg5: memref<8x1xf32, #tpu.memory_space<vmem>>, %arg6: memref<8x4xbf16, #tpu.memory_space<vmem>>, %arg7: memref<8x1xf32, #tpu.memory_space<vmem>>, %arg8: memref<8x512xbf16, #tpu.memory_space<vmem>>) attributes {dimension_semantics = [#tpu.dimension_semantics<parallel>], iteration_bounds = array<i64: 2>, scalar_prefetch = 0 : i64, scratch_operands = 0 : i64, tpu.core_type = #tpu.core_type<tc>, window_params = [{transform_indices = @transform_0, window_bounds = array<i64: 4, 512>}, {pipeline_mode = #tpu.pipeline_mode<synchronous>, transform_indices = @transform_1, window_bounds = array<i64: 3, 8, 4>}, {pipeline_mode = #tpu.pipeline_mode<synchronous>, transform_indices = @transform_2, window_bounds = array<i64: 8, 1>}, {pipeline_mode = #tpu.pipeline_mode<synchronous>, transform_indices = @transform_3, window_bounds = array<i64: 3, 8, 8>}, {pipeline_mode = #tpu.pipeline_mode<synchronous>, transform_indices = @transform_4, window_bounds = array<i64: 8, 1>}, {pipeline_mode = #tpu.pipeline_mode<synchronous>, transform_indices = @transform_5, window_bounds = array<i64: 8, 4>}, {pipeline_mode = #tpu.pipeline_mode<synchronous>, transform_indices = @transform_6, window_bounds = array<i64: 8, 1>}, {transform_indices = @transform_7, window_bounds = array<i64: 8, 512>}]} {
    %c0 = arith.constant 0 : index
    %c0_0 = arith.constant 0 : index
    %0 = vector.load %arg1[%c0, %c0_0] : memref<4x512xf32, #tpu.memory_space<vmem>>, vector<4x512xf32>
    %1 = tpu.iota {dimensions = array<i32: 1>} : vector<1x512xi32>
    %c128_i32 = arith.constant 128 : i32
    %c0_i32 = arith.constant 0 : i32
    %2 = arith.cmpi eq, %c128_i32, %c0_i32 : i32
    %c1_i32 = arith.constant 1 : i32
    %3 = arith.select %2, %c1_i32, %c128_i32 : i32
    %4 = vector.broadcast %3 : i32 to vector<1x512xi32>
    %5 = arith.remsi %1, %4 : vector<1x512xi32>
    %c0_i32_1 = arith.constant 0 : i32
    %6 = vector.broadcast %c0_i32_1 : i32 to vector<1x512xi32>
    %7 = arith.cmpi ne, %5, %6 : vector<1x512xi32>
    %c0_i32_2 = arith.constant 0 : i32
    %8 = vector.broadcast %c0_i32_2 : i32 to vector<1x512xi32>
    %9 = arith.cmpi slt, %5, %8 : vector<1x512xi32>
    %c0_i32_3 = arith.constant 0 : i32
    %10 = arith.cmpi slt, %3, %c0_i32_3 : i32
    %11 = vector.broadcast %10 : i1 to vector<1x512xi1>
    %12 = vector.broadcast %11 : vector<1x512xi1> to vector<1x512xi1>
    %13 = arith.xori %9, %12 : vector<1x512xi1>
    %14 = arith.andi %13, %7 : vector<1x512xi1>
    %15 = vector.broadcast %3 : i32 to vector<1x512xi32>
    %16 = arith.addi %5, %15 : vector<1x512xi32>
    %17 = arith.select %14, %16, %5 : vector<1x512xi1>, vector<1x512xi32>
    %c1_i32_4 = arith.constant 1 : i32
    %18 = vector.broadcast %c1_i32_4 : i32 to vector<1x512xi32>
    %19 = arith.cmpi sge, %17, %18 : vector<1x512xi32>
    %20 = arith.extui %19 : vector<1x512xi1> to vector<1x512xi32>
    %21 = arith.sitofp %20 : vector<1x512xi32> to vector<1x512xf32>
    %c127_i32 = arith.constant 127 : i32
    %22 = vector.broadcast %c127_i32 : i32 to vector<1x512xi32>
    %23 = arith.cmpi slt, %17, %22 : vector<1x512xi32>
    %24 = arith.extui %23 : vector<1x512xi1> to vector<1x512xi32>
    %25 = arith.sitofp %24 : vector<1x512xi32> to vector<1x512xf32>
    %c0_5 = arith.constant 0 : index
    %c0_6 = arith.constant 0 : index
    %26 = vector.load %arg3[%c0_5, %c0_6] : memref<8x1xf32, #tpu.memory_space<vmem>>, vector<8x1xf32>
    %c0_7 = arith.constant 0 : index
    %c0_8 = arith.constant 0 : index
    %c0_9 = arith.constant 0 : index
    %27 = vector.load %arg2[%c0_7, %c0_8, %c0_9] : memref<3x8x4xbf16, #tpu.memory_space<vmem>>, vector<1x8x4xbf16>
    %28 = vector.shape_cast %27 : vector<1x8x4xbf16> to vector<8x4xbf16>
    %c1_i32_10 = arith.constant 1 : i32
    %29 = tpu.dynamic_rotate %0 by %c1_i32_10 dim 1 : vector<4x512xf32>, i32 -> vector<4x512xf32>
    %30 = vector.broadcast %21 : vector<1x512xf32> to vector<4x512xf32>
    %31 = arith.mulf %29, %30 : vector<4x512xf32>
    %32 = arith.truncf %31 : vector<4x512xf32> to vector<4x512xbf16>
    %cst = arith.constant dense<0.000000e+00> : vector<8x512xf32>
    %33 = tpu.matmul %28, %32, %cst {dimension_numbers = #tpu.dot_dimension_numbers<[1], [0], [0], [1], [0, 0, 1, 1], [], []>} : vector<8x4xbf16>, vector<4x512xbf16>, vector<8x512xf32> -> vector<8x512xf32>
    %34 = vector.broadcast %26 : vector<8x1xf32> to vector<8x512xf32>
    %35 = arith.addf %34, %33 : vector<8x512xf32>
    %c1 = arith.constant 1 : index
    %c0_11 = arith.constant 0 : index
    %c0_12 = arith.constant 0 : index
    %36 = vector.load %arg2[%c1, %c0_11, %c0_12] : memref<3x8x4xbf16, #tpu.memory_space<vmem>>, vector<1x8x4xbf16>
    %37 = vector.shape_cast %36 : vector<1x8x4xbf16> to vector<8x4xbf16>
    %38 = arith.truncf %0 : vector<4x512xf32> to vector<4x512xbf16>
    %cst_13 = arith.constant dense<0.000000e+00> : vector<8x512xf32>
    %39 = tpu.matmul %37, %38, %cst_13 {dimension_numbers = #tpu.dot_dimension_numbers<[1], [0], [0], [1], [0, 0, 1, 1], [], []>} : vector<8x4xbf16>, vector<4x512xbf16>, vector<8x512xf32> -> vector<8x512xf32>
    %40 = arith.addf %35, %39 : vector<8x512xf32>
    %c2 = arith.constant 2 : index
    %c0_14 = arith.constant 0 : index
    %c0_15 = arith.constant 0 : index
    %41 = vector.load %arg2[%c2, %c0_14, %c0_15] : memref<3x8x4xbf16, #tpu.memory_space<vmem>>, vector<1x8x4xbf16>
    %42 = vector.shape_cast %41 : vector<1x8x4xbf16> to vector<8x4xbf16>
    %c511_i32 = arith.constant 511 : i32
    %43 = tpu.dynamic_rotate %0 by %c511_i32 dim 1 : vector<4x512xf32>, i32 -> vector<4x512xf32>
    %44 = vector.broadcast %25 : vector<1x512xf32> to vector<4x512xf32>
    %45 = arith.mulf %43, %44 : vector<4x512xf32>
    %46 = arith.truncf %45 : vector<4x512xf32> to vector<4x512xbf16>
    %cst_16 = arith.constant dense<0.000000e+00> : vector<8x512xf32>
    %47 = tpu.matmul %42, %46, %cst_16 {dimension_numbers = #tpu.dot_dimension_numbers<[1], [0], [0], [1], [0, 0, 1, 1], [], []>} : vector<8x4xbf16>, vector<4x512xbf16>, vector<8x512xf32> -> vector<8x512xf32>
    %48 = arith.addf %40, %47 : vector<8x512xf32>
    %cst_17 = arith.constant 0.000000e+00 : f32
    %49 = vector.broadcast %cst_17 : f32 to vector<8x512xf32>
    %50 = arith.maximumf %48, %49 : vector<8x512xf32>
    %c0_18 = arith.constant 0 : index
    %c0_19 = arith.constant 0 : index
    %51 = vector.load %arg5[%c0_18, %c0_19] : memref<8x1xf32, #tpu.memory_space<vmem>>, vector<8x1xf32>
    %c0_20 = arith.constant 0 : index
    %c0_21 = arith.constant 0 : index
    %c0_22 = arith.constant 0 : index
    %52 = vector.load %arg4[%c0_20, %c0_21, %c0_22] : memref<3x8x8xbf16, #tpu.memory_space<vmem>>, vector<1x8x8xbf16>
    %53 = vector.shape_cast %52 : vector<1x8x8xbf16> to vector<8x8xbf16>
    %c1_i32_23 = arith.constant 1 : i32
    %54 = tpu.dynamic_rotate %50 by %c1_i32_23 dim 1 : vector<8x512xf32>, i32 -> vector<8x512xf32>
    %55 = vector.broadcast %21 : vector<1x512xf32> to vector<8x512xf32>
    %56 = arith.mulf %54, %55 : vector<8x512xf32>
    %57 = arith.truncf %56 : vector<8x512xf32> to vector<8x512xbf16>
    %cst_24 = arith.constant dense<0.000000e+00> : vector<8x512xf32>
    %58 = tpu.matmul %53, %57, %cst_24 {dimension_numbers = #tpu.dot_dimension_numbers<[1], [0], [0], [1], [0, 0, 1, 1], [], []>} : vector<8x8xbf16>, vector<8x512xbf16>, vector<8x512xf32> -> vector<8x512xf32>
    %59 = vector.broadcast %51 : vector<8x1xf32> to vector<8x512xf32>
    %60 = arith.addf %59, %58 : vector<8x512xf32>
    %c1_25 = arith.constant 1 : index
    %c0_26 = arith.constant 0 : index
    %c0_27 = arith.constant 0 : index
    %61 = vector.load %arg4[%c1_25, %c0_26, %c0_27] : memref<3x8x8xbf16, #tpu.memory_space<vmem>>, vector<1x8x8xbf16>
    %62 = vector.shape_cast %61 : vector<1x8x8xbf16> to vector<8x8xbf16>
    %63 = arith.truncf %50 : vector<8x512xf32> to vector<8x512xbf16>
    %cst_28 = arith.constant dense<0.000000e+00> : vector<8x512xf32>
    %64 = tpu.matmul %62, %63, %cst_28 {dimension_numbers = #tpu.dot_dimension_numbers<[1], [0], [0], [1], [0, 0, 1, 1], [], []>} : vector<8x8xbf16>, vector<8x512xbf16>, vector<8x512xf32> -> vector<8x512xf32>
    %65 = arith.addf %60, %64 : vector<8x512xf32>
    %c2_29 = arith.constant 2 : index
    %c0_30 = arith.constant 0 : index
    %c0_31 = arith.constant 0 : index
    %66 = vector.load %arg4[%c2_29, %c0_30, %c0_31] : memref<3x8x8xbf16, #tpu.memory_space<vmem>>, vector<1x8x8xbf16>
    %67 = vector.shape_cast %66 : vector<1x8x8xbf16> to vector<8x8xbf16>
    %c511_i32_32 = arith.constant 511 : i32
    %68 = tpu.dynamic_rotate %50 by %c511_i32_32 dim 1 : vector<8x512xf32>, i32 -> vector<8x512xf32>
    %69 = vector.broadcast %25 : vector<1x512xf32> to vector<8x512xf32>
    %70 = arith.mulf %68, %69 : vector<8x512xf32>
    %71 = arith.truncf %70 : vector<8x512xf32> to vector<8x512xbf16>
    %cst_33 = arith.constant dense<0.000000e+00> : vector<8x512xf32>
    %72 = tpu.matmul %67, %71, %cst_33 {dimension_numbers = #tpu.dot_dimension_numbers<[1], [0], [0], [1], [0, 0, 1, 1], [], []>} : vector<8x8xbf16>, vector<8x512xbf16>, vector<8x512xf32> -> vector<8x512xf32>
    %73 = arith.addf %65, %72 : vector<8x512xf32>
    %cst_34 = arith.constant 0.000000e+00 : f32
    %74 = vector.broadcast %cst_34 : f32 to vector<8x512xf32>
    %75 = arith.maximumf %73, %74 : vector<8x512xf32>
    %c0_35 = arith.constant 0 : index
    %c0_36 = arith.constant 0 : index
    %76 = vector.load %arg6[%c0_35, %c0_36] : memref<8x4xbf16, #tpu.memory_space<vmem>>, vector<8x4xbf16>
    %77 = arith.truncf %0 : vector<4x512xf32> to vector<4x512xbf16>
    %cst_37 = arith.constant dense<0.000000e+00> : vector<8x512xf32>
    %78 = tpu.matmul %76, %77, %cst_37 {dimension_numbers = #tpu.dot_dimension_numbers<[1], [0], [0], [1], [0, 0, 1, 1], [], []>} : vector<8x4xbf16>, vector<4x512xbf16>, vector<8x512xf32> -> vector<8x512xf32>
    %c0_38 = arith.constant 0 : index
    %c0_39 = arith.constant 0 : index
    %79 = vector.load %arg7[%c0_38, %c0_39] : memref<8x1xf32, #tpu.memory_space<vmem>>, vector<8x1xf32>
    %80 = vector.broadcast %79 : vector<8x1xf32> to vector<8x512xf32>
    %81 = arith.addf %78, %80 : vector<8x512xf32>
    %82 = arith.addf %75, %81 : vector<8x512xf32>
    %cst_40 = arith.constant 0.000000e+00 : f32
    %83 = vector.broadcast %cst_40 : f32 to vector<8x512xf32>
    %84 = arith.maximumf %82, %83 : vector<8x512xf32>
    %85 = arith.truncf %84 : vector<8x512xf32> to vector<8x512xbf16>
    %c0_41 = arith.constant 0 : index
    %c0_42 = arith.constant 0 : index
    %86 = vector.load %arg8[%c0_41, %c0_42] : memref<8x512xbf16, #tpu.memory_space<vmem>>, vector<8x512xbf16>
    tpu.vector_store %arg8[%c0_41, %c0_42], %85 {strides = array<i32>} : memref<8x512xbf16, #tpu.memory_space<vmem>>, vector<8x512xbf16>,
    return
  }
  func.func @transform_0(%arg0: i32) -> (i32, i32) {
    %c0_i32 = arith.constant 0 : i32
    %c0_i32_0 = arith.constant 0 : i32
    return %c0_i32, %arg0 : i32, i32
  }
  func.func @transform_1(%arg0: i32) -> (i32, i32, i32) {
    %c0_i32 = arith.constant 0 : i32
    %c0_i32_0 = arith.constant 0 : i32
    %c0_i32_1 = arith.constant 0 : i32
    %c0_i32_2 = arith.constant 0 : i32
    return %c0_i32, %c0_i32_0, %c0_i32_1 : i32, i32, i32
  }
  func.func @transform_2(%arg0: i32) -> (i32, i32) {
    %c0_i32 = arith.constant 0 : i32
    %c0_i32_0 = arith.constant 0 : i32
    %c0_i32_1 = arith.constant 0 : i32
    return %c0_i32, %c0_i32_0 : i32, i32
  }
  func.func @transform_3(%arg0: i32) -> (i32, i32, i32) {
    %c0_i32 = arith.constant 0 : i32
    %c0_i32_0 = arith.constant 0 : i32
    %c0_i32_1 = arith.constant 0 : i32
    %c0_i32_2 = arith.constant 0 : i32
    return %c0_i32, %c0_i32_0, %c0_i32_1 : i32, i32, i32
  }
  func.func @transform_4(%arg0: i32) -> (i32, i32) {
    %c0_i32 = arith.constant 0 : i32
    %c0_i32_0 = arith.constant 0 : i32
    %c0_i32_1 = arith.constant 0 : i32
    return %c0_i32, %c0_i32_0 : i32, i32
  }
  func.func @transform_5(%arg0: i32) -> (i32, i32) {
    %c0_i32 = arith.constant 0 : i32
    %c0_i32_0 = arith.constant 0 : i32
    %c0_i32_1 = arith.constant 0 : i32
    return %c0_i32, %c0_i32_0 : i32, i32
  }
  func.func @transform_6(%arg0: i32) -> (i32, i32) {
    %c0_i32 = arith.constant 0 : i32
    %c0_i32_0 = arith.constant 0 : i32
    %c0_i32_1 = arith.constant 0 : i32
    return %c0_i32, %c0_i32_0 : i32, i32
  }
  func.func @transform_7(%arg0: i32) -> (i32, i32) {
    %c0_i32 = arith.constant 0 : i32
    %c0_i32_0 = arith.constant 0 : i32
    return %c0_i32, %arg0 : i32, i32
  }
}

module attributes {stable_mosaic.version = 11 : i64} {
  func.func @temporal_block_kernel(%arg0: i32, %arg1: memref<4x512xf32, #tpu.memory_space<vmem>>, %arg2: memref<3x8x4xbf16, #tpu.memory_space<vmem>>, %arg3: memref<8x1xf32, #tpu.memory_space<vmem>>, %arg4: memref<3x8x8xbf16, #tpu.memory_space<vmem>>, %arg5: memref<8x1xf32, #tpu.memory_space<vmem>>, %arg6: memref<8x4xbf16, #tpu.memory_space<vmem>>, %arg7: memref<8x1xf32, #tpu.memory_space<vmem>>, %arg8: memref<8x512xbf16, #tpu.memory_space<vmem>>) attributes {dimension_semantics = [#tpu.dimension_semantics<parallel>], iteration_bounds = array<i64: 2>, scalar_prefetch = 0 : i64, scratch_operands = 0 : i64, tpu.core_type = #tpu.core_type<tc>, window_params = [{transform_indices = @transform_0, window_bounds = array<i64: 4, 512>}, {pipeline_mode = #tpu.pipeline_mode<synchronous>, transform_indices = @transform_1, window_bounds = array<i64: 3, 8, 4>}, {pipeline_mode = #tpu.pipeline_mode<synchronous>, transform_indices = @transform_2, window_bounds = array<i64: 8, 1>}, {pipeline_mode = #tpu.pipeline_mode<synchronous>, transform_indices = @transform_3, window_bounds = array<i64: 3, 8, 8>}, {pipeline_mode = #tpu.pipeline_mode<synchronous>, transform_indices = @transform_4, window_bounds = array<i64: 8, 1>}, {pipeline_mode = #tpu.pipeline_mode<synchronous>, transform_indices = @transform_5, window_bounds = array<i64: 8, 4>}, {pipeline_mode = #tpu.pipeline_mode<synchronous>, transform_indices = @transform_6, window_bounds = array<i64: 8, 1>}, {transform_indices = @transform_7, window_bounds = array<i64: 8, 512>}]} {
    %c0 = arith.constant 0 : index
    %c0_0 = arith.constant 0 : index
    %0 = vector.load %arg1[%c0, %c0_0] : memref<4x512xf32, #tpu.memory_space<vmem>>, vector<4x512xf32>
    %1 = tpu.iota {dimensions = array<i32: 1>} : vector<1x512xi32>
    %c128_i32 = arith.constant 128 : i32
    %c0_i32 = arith.constant 0 : i32
    %2 = arith.cmpi eq, %c128_i32, %c0_i32 : i32
    %c1_i32 = arith.constant 1 : i32
    %3 = arith.select %2, %c1_i32, %c128_i32 : i32
    %4 = vector.broadcast %3 : i32 to vector<1x512xi32>
    %5 = arith.remsi %1, %4 : vector<1x512xi32>
    %c0_i32_1 = arith.constant 0 : i32
    %6 = vector.broadcast %c0_i32_1 : i32 to vector<1x512xi32>
    %7 = arith.cmpi ne, %5, %6 : vector<1x512xi32>
    %c0_i32_2 = arith.constant 0 : i32
    %8 = vector.broadcast %c0_i32_2 : i32 to vector<1x512xi32>
    %9 = arith.cmpi slt, %5, %8 : vector<1x512xi32>
    %c0_i32_3 = arith.constant 0 : i32
    %10 = arith.cmpi slt, %3, %c0_i32_3 : i32
    %11 = vector.broadcast %10 : i1 to vector<1x512xi1>
    %12 = vector.broadcast %11 : vector<1x512xi1> to vector<1x512xi1>
    %13 = arith.xori %9, %12 : vector<1x512xi1>
    %14 = arith.andi %13, %7 : vector<1x512xi1>
    %15 = vector.broadcast %3 : i32 to vector<1x512xi32>
    %16 = arith.addi %5, %15 : vector<1x512xi32>
    %17 = arith.select %14, %16, %5 : vector<1x512xi1>, vector<1x512xi32>
    %c1_i32_4 = arith.constant 1 : i32
    %18 = vector.broadcast %c1_i32_4 : i32 to vector<1x512xi32>
    %19 = arith.cmpi sge, %17, %18 : vector<1x512xi32>
    %20 = arith.extui %19 : vector<1x512xi1> to vector<1x512xi32>
    %21 = arith.sitofp %20 : vector<1x512xi32> to vector<1x512xf32>
    %c127_i32 = arith.constant 127 : i32
    %22 = vector.broadcast %c127_i32 : i32 to vector<1x512xi32>
    %23 = arith.cmpi slt, %17, %22 : vector<1x512xi32>
    %24 = arith.extui %23 : vector<1x512xi1> to vector<1x512xi32>
    %25 = arith.sitofp %24 : vector<1x512xi32> to vector<1x512xf32>
    %c0_5 = arith.constant 0 : index
    %c0_6 = arith.constant 0 : index
    %26 = vector.load %arg3[%c0_5, %c0_6] : memref<8x1xf32, #tpu.memory_space<vmem>>, vector<8x1xf32>
    %c0_7 = arith.constant 0 : index
    %c0_8 = arith.constant 0 : index
    %c0_9 = arith.constant 0 : index
    %27 = vector.load %arg2[%c0_7, %c0_8, %c0_9] : memref<3x8x4xbf16, #tpu.memory_space<vmem>>, vector<1x8x4xbf16>
    %28 = vector.shape_cast %27 : vector<1x8x4xbf16> to vector<8x4xbf16>
    %c1_i32_10 = arith.constant 1 : i32
    %29 = tpu.dynamic_rotate %0 by %c1_i32_10 dim 1 : vector<4x512xf32>, i32 -> vector<4x512xf32>
    %30 = vector.broadcast %21 : vector<1x512xf32> to vector<4x512xf32>
    %31 = arith.mulf %29, %30 : vector<4x512xf32>
    %32 = arith.truncf %31 : vector<4x512xf32> to vector<4x512xbf16>
    %cst = arith.constant dense<0.000000e+00> : vector<8x512xf32>
    %33 = tpu.matmul %28, %32, %cst {dimension_numbers = #tpu.dot_dimension_numbers<[1], [0], [0], [1], [0, 0, 1, 1], [], []>} : vector<8x4xbf16>, vector<4x512xbf16>, vector<8x512xf32> -> vector<8x512xf32>
    %34 = vector.broadcast %26 : vector<8x1xf32> to vector<8x512xf32>
    %35 = arith.addf %34, %33 : vector<8x512xf32>
    %c1 = arith.constant 1 : index
    %c0_11 = arith.constant 0 : index
    %c0_12 = arith.constant 0 : index
    %36 = vector.load %arg2[%c1, %c0_11, %c0_12] : memref<3x8x4xbf16, #tpu.memory_space<vmem>>, vector<1x8x4xbf16>
    %37 = vector.shape_cast %36 : vector<1x8x4xbf16> to vector<8x4xbf16>
    %38 = arith.truncf %0 : vector<4x512xf32> to vector<4x512xbf16>
    %cst_13 = arith.constant dense<0.000000e+00> : vector<8x512xf32>
    %39 = tpu.matmul %37, %38, %cst_13 {dimension_numbers = #tpu.dot_dimension_numbers<[1], [0], [0], [1], [0, 0, 1, 1], [], []>} : vector<8x4xbf16>, vector<4x512xbf16>, vector<8x512xf32> -> vector<8x512xf32>
    %40 = arith.addf %35, %39 : vector<8x512xf32>
    %c2 = arith.constant 2 : index
    %c0_14 = arith.constant 0 : index
    %c0_15 = arith.constant 0 : index
    %41 = vector.load %arg2[%c2, %c0_14, %c0_15] : memref<3x8x4xbf16, #tpu.memory_space<vmem>>, vector<1x8x4xbf16>
    %42 = vector.shape_cast %41 : vector<1x8x4xbf16> to vector<8x4xbf16>
    %c511_i32 = arith.constant 511 : i32
    %43 = tpu.dynamic_rotate %0 by %c511_i32 dim 1 : vector<4x512xf32>, i32 -> vector<4x512xf32>
    %44 = vector.broadcast %25 : vector<1x512xf32> to vector<4x512xf32>
    %45 = arith.mulf %43, %44 : vector<4x512xf32>
    %46 = arith.truncf %45 : vector<4x512xf32> to vector<4x512xbf16>
    %cst_16 = arith.constant dense<0.000000e+00> : vector<8x512xf32>
    %47 = tpu.matmul %42, %46, %cst_16 {dimension_numbers = #tpu.dot_dimension_numbers<[1], [0], [0], [1], [0, 0, 1, 1], [], []>} : vector<8x4xbf16>, vector<4x512xbf16>, vector<8x512xf32> -> vector<8x512xf32>
    %48 = arith.addf %40, %47 : vector<8x512xf32>
    %cst_17 = arith.constant 0.000000e+00 : f32
    %49 = vector.broadcast %cst_17 : f32 to vector<8x512xf32>
    %50 = arith.maximumf %48, %49 : vector<8x512xf32>
    %c0_18 = arith.constant 0 : index
    %c0_19 = arith.constant 0 : index
    %51 = vector.load %arg5[%c0_18, %c0_19] : memref<8x1xf32, #tpu.memory_space<vmem>>, vector<8x1xf32>
    %c0_20 = arith.constant 0 : index
    %c0_21 = arith.constant 0 : index
    %c0_22 = arith.constant 0 : index
    %52 = vector.load %arg4[%c0_20, %c0_21, %c0_22] : memref<3x8x8xbf16, #tpu.memory_space<vmem>>, vector<1x8x8xbf16>
    %53 = vector.shape_cast %52 : vector<1x8x8xbf16> to vector<8x8xbf16>
    %c1_i32_23 = arith.constant 1 : i32
    %54 = tpu.dynamic_rotate %50 by %c1_i32_23 dim 1 : vector<8x512xf32>, i32 -> vector<8x512xf32>
    %55 = vector.broadcast %21 : vector<1x512xf32> to vector<8x512xf32>
    %56 = arith.mulf %54, %55 : vector<8x512xf32>
    %57 = arith.truncf %56 : vector<8x512xf32> to vector<8x512xbf16>
    %cst_24 = arith.constant dense<0.000000e+00> : vector<8x512xf32>
    %58 = tpu.matmul %53, %57, %cst_24 {dimension_numbers = #tpu.dot_dimension_numbers<[1], [0], [0], [1], [0, 0, 1, 1], [], []>} : vector<8x8xbf16>, vector<8x512xbf16>, vector<8x512xf32> -> vector<8x512xf32>
    %59 = vector.broadcast %51 : vector<8x1xf32> to vector<8x512xf32>
    %60 = arith.addf %59, %58 : vector<8x512xf32>
    %c1_25 = arith.constant 1 : index
    %c0_26 = arith.constant 0 : index
    %c0_27 = arith.constant 0 : index
    %61 = vector.load %arg4[%c1_25, %c0_26, %c0_27] : memref<3x8x8xbf16, #tpu.memory_space<vmem>>, vector<1x8x8xbf16>
    %62 = vector.shape_cast %61 : vector<1x8x8xbf16> to vector<8x8xbf16>
    %63 = arith.truncf %50 : vector<8x512xf32> to vector<8x512xbf16>
    %cst_28 = arith.constant dense<0.000000e+00> : vector<8x512xf32>
    %64 = tpu.matmul %62, %63, %cst_28 {dimension_numbers = #tpu.dot_dimension_numbers<[1], [0], [0], [1], [0, 0, 1, 1], [], []>} : vector<8x8xbf16>, vector<8x512xbf16>, vector<8x512xf32> -> vector<8x512xf32>
    %65 = arith.addf %60, %64 : vector<8x512xf32>
    %c2_29 = arith.constant 2 : index
    %c0_30 = arith.constant 0 : index
    %c0_31 = arith.constant 0 : index
    %66 = vector.load %arg4[%c2_29, %c0_30, %c0_31] : memref<3x8x8xbf16, #tpu.memory_space<vmem>>, vector<1x8x8xbf16>
    %67 = vector.shape_cast %66 : vector<1x8x8xbf16> to vector<8x8xbf16>
    %c511_i32_32 = arith.constant 511 : i32
    %68 = tpu.dynamic_rotate %50 by %c511_i32_32 dim 1 : vector<8x512xf32>, i32 -> vector<8x512xf32>
    %69 = vector.broadcast %25 : vector<1x512xf32> to vector<8x512xf32>
    %70 = arith.mulf %68, %69 : vector<8x512xf32>
    %71 = arith.truncf %70 : vector<8x512xf32> to vector<8x512xbf16>
    %cst_33 = arith.constant dense<0.000000e+00> : vector<8x512xf32>
    %72 = tpu.matmul %67, %71, %cst_33 {dimension_numbers = #tpu.dot_dimension_numbers<[1], [0], [0], [1], [0, 0, 1, 1], [], []>} : vector<8x8xbf16>, vector<8x512xbf16>, vector<8x512xf32> -> vector<8x512xf32>
    %73 = arith.addf %65, %72 : vector<8x512xf32>
    %cst_34 = arith.constant 0.000000e+00 : f32
    %74 = vector.broadcast %cst_34 : f32 to vector<8x512xf32>
    %75 = arith.maximumf %73, %74 : vector<8x512xf32>
    %c0_35 = arith.constant 0 : index
    %c0_36 = arith.constant 0 : index
    %76 = vector.load %arg6[%c0_35, %c0_36] : memref<8x4xbf16, #tpu.memory_space<vmem>>, vector<8x4xbf16>
    %77 = arith.truncf %0 : vector<4x512xf32> to vector<4x512xbf16>
    %cst_37 = arith.constant dense<0.000000e+00> : vector<8x512xf32>
    %78 = tpu.matmul %76, %77, %cst_37 {dimension_numbers = #tpu.dot_dimension_numbers<[1], [0], [0], [1], [0, 0, 1, 1], [], []>} : vector<8x4xbf16>, vector<4x512xbf16>, vector<8x512xf32> -> vector<8x512xf32>
    %c0_38 = arith.constant 0 : index
    %c0_39 = arith.constant 0 : index
    %79 = vector.load %arg7[%c0_38, %c0_39] : memref<8x1xf32, #tpu.memory_space<vmem>>, vector<8x1xf32>
    %80 = vector.broadcast %79 : vector<8x1xf32> to vector<8x512xf32>
    %81 = arith.addf %78, %80 : vector<8x512xf32>
    %82 = arith.addf %75, %81 : vector<8x512xf32>
    %cst_40 = arith.constant 0.000000e+00 : f32
    %83 = vector.broadcast %cst_40 : f32 to vector<8x512xf32>
    %84 = arith.maximumf %82, %83 : vector<8x512xf32>
    %85 = arith.truncf %84 : vector<8x512xf32> to vector<8x512xbf16>
    %c0_41 = arith.constant 0 : index
    %c0_42 = arith.constant 0 : index
    %86 = vector.load %arg8[%c0_41, %c0_42] : memref<8x512xbf16, #tpu.memory_space<vmem>>, vector<8x512xbf16>
    tpu.vector_store %arg8[%c0_41, %c0_42], %85 {strides = array<i32>} : memref<8x512xbf16, #tpu.memory_space<vmem>>, vector<8x512xbf16>,
    return
  }
  func.func @transform_0(%arg0: i32) -> (i32, i32) {
    %c0_i32 = arith.constant 0 : i32
    %c0_i32_0 = arith.constant 0 : i32
    return %c0_i32, %arg0 : i32, i32
  }
  func.func @transform_1(%arg0: i32) -> (i32, i32, i32) {
    %c0_i32 = arith.constant 0 : i32
    %c0_i32_0 = arith.constant 0 : i32
    %c0_i32_1 = arith.constant 0 : i32
    %c0_i32_2 = arith.constant 0 : i32
    return %c0_i32, %c0_i32_0, %c0_i32_1 : i32, i32, i32
  }
  func.func @transform_2(%arg0: i32) -> (i32, i32) {
    %c0_i32 = arith.constant 0 : i32
    %c0_i32_0 = arith.constant 0 : i32
    %c0_i32_1 = arith.constant 0 : i32
    return %c0_i32, %c0_i32_0 : i32, i32
  }
  func.func @transform_3(%arg0: i32) -> (i32, i32, i32) {
    %c0_i32 = arith.constant 0 : i32
    %c0_i32_0 = arith.constant 0 : i32
    %c0_i32_1 = arith.constant 0 : i32
    %c0_i32_2 = arith.constant 0 : i32
    return %c0_i32, %c0_i32_0, %c0_i32_1 : i32, i32, i32
  }
  func.func @transform_4(%arg0: i32) -> (i32, i32) {
    %c0_i32 = arith.constant 0 : i32
    %c0_i32_0 = arith.constant 0 : i32
    %c0_i32_1 = arith.constant 0 : i32
    return %c0_i32, %c0_i32_0 : i32, i32
  }
  func.func @transform_5(%arg0: i32) -> (i32, i32) {
    %c0_i32 = arith.constant 0 : i32
    %c0_i32_0 = arith.constant 0 : i32
    %c0_i32_1 = arith.constant 0 : i32
    return %c0_i32, %c0_i32_0 : i32, i32
  }
  func.func @transform_6(%arg0: i32) -> (i32, i32) {
    %c0_i32 = arith.constant 0 : i32
    %c0_i32_0 = arith.constant 0 : i32
    %c0_i32_1 = arith.constant 0 : i32
    return %c0_i32, %c0_i32_0 : i32, i32
  }
  func.func @transform_7(%arg0: i32) -> (i32, i32) {
    %c0_i32 = arith.constant 0 : i32
    %c0_i32_0 = arith.constant 0 : i32
    return %c0_i32, %arg0 : i32, i32
  }
}

</mosaic_0001>

<bundles_post_ra>
// kernel: tpu_custom_call.1
= control target key start
LH: loop header
LB: loop body
LE: loop exit
PB: predicated region body
PF: predicated region fallthrough
CT: control target
= control target key end

     0   :  { %12 = vsyncpa [#allocation3], 0  ;;  %s1726_s0 = inlined_call_operand.hbm [shape: f32[4,1024], index: 0, kind: input, shape index: {}]   ;;  %s1727_s1 = inlined_call_operand.vmem [shape: bf16[3,8,4], index: 1, kind: input, shape index: {}]   ;;  %s1728_s2 = inlined_call_operand.vmem [shape: f32[8,1], index: 2, kind: input, shape index: {}]   ;;  %s1729_s3 = inlined_call_operand.vmem [shape: bf16[3,8,8], index: 3, kind: input, shape index: {}]   ;;  %s1730_s4 = inlined_call_operand.vmem [shape: f32[8,1], index: 4, kind: input, shape index: {}]   ;;  %s1731_s5 = inlined_call_operand.vmem [shape: bf16[8,4], index: 5, kind: input, shape index: {}]   ;;  %s1732_s6 = inlined_call_operand.vmem [shape: f32[8,1], index: 6, kind: input, shape index: {}]   ;;  %s1733_s7 = inlined_call_operand.hbm [shape: bf16[8,1024], index: 7, kind: output, shape index: {}]  }
   0x1   :  { %14 = vsyncpa [#allocation3 + $0x1], 0 }
   0x2   :  { %15 = vsyncpa [#allocation4], 0 }
   0x3   :  { %17 = vsyncpa [#allocation4 + $0x1], 0  ;;  %s1375_s24 = smov 0   ;;  %s1377_s25 = smov 0  }
   0x4   :  { %s1379_s26 = smov 0   ;;  %s1381_s27 = smov 0  }
   0x5 LB: > { %s1396_s28 = sadd.s32 4294967295, %s1329_s27   ;;  %s1125_s29 = sadd.s32 4294967294, %s1329_s27   ;;  %s1329_s27 = sphi %s1381_s27, %s1751_s27   ;;  %s1325_s26 = sphi %s1379_s26, %s1750_s26   ;;  %s1321_s25 = sphi %s1377_s25, %s1749_s25   ;;  %s1317_s24 = sphi %s1375_s24, %s1748_s24  }
   0x6   : > { %s1400_s30 = sadd.s32 1, %s1329_s27   ;;  %s30_s8 = sadd.s32 1, %s1325_s26 }
   0x7   : > { %s27_s9 = ssub.s32 %s1329_s27, %s1400_s30  ;;  %p37_p0 = scmp.ne.s32.totalorder %s1325_s26, %s1321_s25 }
   0x8   : > { %p28_p1 = scmp.eq.s32.totalorder %s27_s9, 0  ;;  %p38_p2 = scmp.eq.s32.totalorder %s1329_s27, 0 }
   0x9   : > { %p43_p3 = scmp.ne.s32.totalorder %s1321_s25, %s1317_s24  ;;  %p44_p4 = scmp.eq.s32.totalorder %s1396_s28, 0 }
   0xa   : > { %s1412_s10 = scalar_select %p28_p1, %s1325_s26, %s30_s8  }
   0xb   : > { %p1414_p5 = por %p38_p2, %p37_p0  ;;  %p1418_p6 = por %p44_p4, %p43_p3 }
   0xc   : > { %1734 = sst [smem:[#allocation8_spill]] %s1412_s10  ;;  %p193_p7 = scmp.eq.s32.totalorder %s1396_s28, 1 }
   0xd   : > { %p199_p8 = scmp.eq.s32.totalorder %s1125_s29, 1  ;;  %p1193_p10 = scmp.lt.s32.totalorder %s1329_s27, 2 }
   0xe   : > { %p1425_p11 = por %p193_p7, %p37_p0  ;;  %s237_s15 = sand.u32 1, %s1325_s26  }
   0xf   : > { %p1429_p12 = por %p199_p8, %p43_p3  ;;  %s1179_s16 = sshll.u32 %s1329_s27, 4 }
  0x10   : > { %s1128_s17 = sshll.u32 %s237_s15, 4  ;;  %s246_s20 = scalar_lea.hbm %s1726_s0, %s1179_s16 }
  0x11   : > { %s248_s21 = sshll.u32 %s246_s20, 4  ;;  %s241_s22 = scalar_lea.vmem [#allocation2], %s1128_s17  ;;  %s249_s21 = int_to_ptr.hbm [resolvable:$true] %s248_s21 }
  0x12   : > { %s250_s23 = sshll.u32 %s241_s22, 4  ;;  %p1440_p13 = pnand %p1193_p10, %p1414_p5  ;;  %s251_s23 = int_to_ptr.vmem [resolvable:$true] %s250_s23 }
  0x13   : > { %p1131_p0 = scmp.ge.s32.totalorder %s1329_s27, 1  ;;  %p255_p1 = scmp.lt.s32.totalorder %s1329_s27, 3 }
  0x14   : > { %s238_s8 = scalar_lea.sflag [#allocation3], %s237_s15  ;;  %s1233_s9 = sshra.s32 %s249_s21, 4  ;;  %s1234_s9 = int_to_ptr.hbm [resolvable:$true] %s1233_s9 }
  0x15   : > { %s1235_s10 = scalar_lea.hbm %s1234_s9, 16  ;;  %p1237_p3 = pneg %p1440_p13 }
  0x16   : > { %p1236_p2 = scmp.ne.s32.totalorder %s1234_s9, %s1235_s10  ;;  %s1240_s11 = scalar_lea.hbm %s1726_s0, 32 }
  0x17   : > { %p1241_p5 = scmp.lt.s32.totalorder %s1234_s9, %s1726_s0  ;;  %p1242_p8 = scmp.lt.s32.totalorder %s1240_s11, %s1235_s10 }
  0x18   : > { %p1238_p4 = pnand %p1237_p3, %p1236_p2 }
  0x19   : > { %p1243_p10 = por %p1242_p8, %p1241_p5 }
  0x1a   : > { %p1239_p7 = pneg %p1238_p4 }
  0x1c   : > { %p1244_p9 = pnand %p1243_p10, %p1239_p7 }
  0x1e   : > { %1247 = shalt.err (!%p1244_p9)
}
  0x1f   : > { %1188 = dma.hbm_to_vmem [thread:$0]  (!%p1440_p13), %s249_s21, 256, %s251_s23, %s238_s8  }
  0x20   : > { %p256_p2 = pnand %p1131_p0, %p255_p1 }
  0x21   : > { %s1461_s15 = sand.u32 (!%p256_p2), 1, %s1321_s25  }
  0x22   : > { %259 = sbr.rel (%p256_p2) target bundleno = 666 (0x29a), region = 48  ;;  %s1132_s10 = sshll.u32 (!%p256_p2), %s1461_s15, 4 }
  0x23   : > { %s262_s20 = scalar_lea.sflag (!%p256_p2), [#allocation3], %s1461_s15  ;;  %s265_s22 = scalar_lea.vmem (!%p256_p2), [#allocation2], %s1132_s10 }
  0x27   : > { %1308 = dma.done.wait (%p1418_p6), %s262_s20, 256  }
  0x28   : > { %1310 = vsyncadd (%p1418_p6), %s262_s20, 4294967040  ;;  %v301_v0 = vld [vmem:[%s265_s22 + $0x8] sm:$0xff]  ;;  %v300_v1 = vld [vmem:[%s265_s22] sm:$0xff]  ;;  %s1331_s21 = smov 1   ;;  %s1332_s12 = smov 127   ;;  %v302_v14 = vlaneseq  ;;  %v1333_v25 = vmov 0.0  }
  0x29   : > { %385 = vst [vmem:[#allocation1 + $0x10] ss:$2 sm:$0xff] %v301_v0  ;;  %vm419_vm5 = vcmask 1041408   ;;  %v380_v57 = vld [vmem:[%s1727_s1] sm:$0xf]  ;;  %vm415_vm10 = vcmask 31744  }
  0x2a   : > { %383 = vst [vmem:[#allocation1] ss:$2 sm:$0xff] %v300_v1  ;;  %v1483_v15 = vand.u32 127, %v302_v14  ;;  %vm716_vm11 = vcmask 1043456   ;;  %vm712_vm12 = vcmask 64512   ;;  %s1180_s18 = sshll.u32 %s1396_s28, 4 }
  0x2b   : > { %s1050_s22 = scalar_lea.hbm %s1733_s7, %s1180_s18  ;;  %s296_s28 = scalar_lea.vmem [#allocation5], %s1132_s10 }
  0x2c   : > { %v304_v16 = vadd.s32 128, %v1483_v15  ;;  %v305_v17 = vadd.s32 256, %v1483_v15  ;;  %v306_v18 = vadd.s32 384, %v1483_v15  ;;  %vm355_vm0 = vcmp.ge.s32.totalorder %v1483_v15, 1  ;;  %s1039_s23 = scalar_lea.sflag [#allocation4], %s1461_s15  ;;  %s1283_s16 = scalar_lea.hbm %s1733_s7, 32 }
  0x2d   : > { %vm402_vm4 = vcmp.lt.s32.totalorder %v1483_v15, 1  ;;  %v1490_v26 = vsel %vm355_vm0, 1.0, %v1333_v25  ;;  %vm367_vm6 = vcmp.lt.s32.totalorder %v1483_v15, 127  ;;  %v965_v15 = vld [vmem:[%s1732_s6] sm:$0xff] }
  0x2e   : > { %v318_v20 = vand.u32 127, %v304_v16  ;;  %v325_v22 = vand.u32 127, %v305_v17  ;;  %v332_v23 = vand.u32 127, %v306_v18  ;;  %v1554_v63 = vsel %vm367_vm6, 1.0, %v1333_v25 }
  0x30   : > { %v389_v2 = vld.sshfl [vmem:[#allocation1 + $0x18] sm:$0xff pattern:$0x75316420]  ;;  %v388_v3 = vld.sshfl [vmem:[#allocation1 + $0x10] sm:$0xff pattern:$0x75316420] }
  0x31   : > { %400 = vrot.lane.b32.xlu1 %v389_v2, %s1331_s21  ;;  %v387_v4 = vld.sshfl [vmem:[#allocation1 + $0x8] sm:$0xff pattern:$0x75316420]  ;;  %497 = vst [vmem:[#allocation1 + $0x10] ss:$2 sm:$0xff] %v301_v0  ;;  %vm356_vm1 = vcmp.ge.s32.totalorder %v318_v20, 1 }
  0x32   : > { %396 = vrot.lane.b32.xlu0 %v387_v4, %s1331_s21  ;;  %v386_v5 = vld.sshfl [vmem:[#allocation1] sm:$0xff pattern:$0x75316420]  ;;  %vm357_vm2 = vcmp.ge.s32.totalorder %v325_v22, 1  ;;  %vm358_vm3 = vcmp.ge.s32.totalorder %v332_v23, 1  ;;  %v1492_v27 = vsel %vm356_vm1, 1.0, %v1333_v25 }
  0x33   : > { %495 = vst [vmem:[#allocation1] ss:$2 sm:$0xff] %v300_v1  ;;  %v1494_v29 = vsel %vm357_vm2, 1.0, %v1333_v25  ;;  %v1496_v30 = vsel %vm358_vm3, 1.0, %v1333_v25  ;;  %vm1515_vm7 = vcmp.lt.s32.totalorder %v332_v23, 127  ;;  %vm1527_vm8 = vcmp.lt.s32.totalorder %v318_v20, 127 }
  0x34   : > { %vm1531_vm9 = vcmp.lt.s32.totalorder %v325_v22, 127  ;;  %v1545_v60 = vsel %vm1515_vm7, 1.0, %v1333_v25  ;;  %v1146_v22 = vld [vmem:[%s1727_s1 + $0x4] sm:$0xf]  ;;  %v1151_v23 = vld [vmem:[%s1727_s1 + $0x8] sm:$0xf] }
  0x38   : > { %v1473_v6 = vld.sshfl [vmem:[#allocation1 + $0x10] sm:$0xff pattern:$0x75316420]  ;;  %v1475_v7 = vld.sshfl [vmem:[#allocation1 + $0x18] sm:$0xff pattern:$0x75316420] }
  0x39   : > { %585 = vst [vmem:[#allocation1 + $0x10] ss:$2 sm:$0xff] %v301_v0  ;;  %394 = vrot.lane.b32.xlu1 %v386_v5, %s1331_s21  ;;  %v508_v42 = vpack.c.bf16 %v1473_v6, %v1473_v6  ;;  %v509_v43 = vpack.c.bf16 %v1475_v7, %v1475_v7  ;;  %v1558_v0 = vsel %vm1527_vm8, 1.0, %v1333_v25 }
  0x3a   : > { %398 = vrot.lane.b32.xlu0 %v388_v3, %s1331_s21  ;;  %v498_v8 = vld.sshfl [vmem:[#allocation1] sm:$0xff pattern:$0x75316420]  ;;  %v499_v9 = vld.sshfl [vmem:[#allocation1 + $0x8] sm:$0xff pattern:$0x75316420] }
  0x3b   : > { %583 = vst [vmem:[#allocation1] ss:$2 sm:$0xff] %v300_v1  ;;  %v506_v34 = vpack.c.bf16 %v498_v8, %v498_v8  ;;  %v507_v35 = vpack.c.bf16 %v499_v9, %v499_v9  ;;  %v1541_v59 = vsel %vm419_vm5, %v508_v42, 0  ;;  %v1550_v61 = vsel %vm419_vm5, %v509_v43, 0  ;;  %v379_v8 = vld [vmem:[%s1728_s2] sm:$0xff] }
  0x3c   : > { %v1562_v1 = vsel %vm1531_vm9, 1.0, %v1333_v25 }
  0x3d   : > { %v1520_v49 = vsel %vm419_vm5, %v506_v34, 0  ;;  %v1523_v50 = vsel %vm419_vm5, %v507_v35, 0 }
  0x40   : > { %v589_v10 = vld.sshfl [vmem:[#allocation1 + $0x18] sm:$0xff pattern:$0x75316420]  ;;  %v588_v13 = vld.sshfl [vmem:[#allocation1 + $0x10] sm:$0xff pattern:$0x75316420] }
  0x42   : > { %600 = vrot.lane.b32.xlu0 %v589_v10, %s1332_s12  ;;  %v587_v11 = vld.sshfl [vmem:[#allocation1 + $0x8] sm:$0xff pattern:$0x75316420]  ;;  %v586_v12 = vld.sshfl [vmem:[#allocation1] sm:$0xff pattern:$0x75316420] }
  0x43   : > { %596 = vrot.lane.b32.xlu1 %v587_v11, %s1332_s12  ;;  %594 = vrot.lane.b32.xlu2 %v586_v12, %s1332_s12 }
  0x4b   : > { %598 = vrot.lane.b32.xlu2 %v588_v13, %s1332_s12  ;;  %v1334_v13 = vmov 0  }
  0x4c   : > { %1231 = vset.pattern.permute.xlu2 %v1334_v13  ;;  %1232 = vset.pattern.permute.xlu0 %v1334_v13  ;;  %v690_v13 = vld [vmem:[%s1730_s4] sm:$0xff] }
  0x53   : > { %486 = vperm.xlu2 %1231, %v379_v8  }
  0x9d   : > { %v595_v24 = vpop.permute.xlu2 %594 }
  0xa3   : > { %v401_v19 = vpop.permute.xlu1 %400 }
  0xa4   : > { %v397_v21 = vpop.permute.xlu0 %396 }
  0xa5   : > { %v599_v58 = vpop.permute.xlu2 %598 }
  0xab   : > { %v395_v28 = vpop.permute.xlu1 %394 }
  0xac   : > { %v399_v31 = vpop.permute.xlu0 %398  ;;  %v405_v32 = vsel %vm402_vm4, %v395_v28, %v397_v21  ;;  %v406_v33 = vsel %vm402_vm4, %v401_v19, %v395_v28 }
  0xad   : > { %v403_v36 = vsel %vm402_vm4, %v399_v31, %v401_v19  ;;  %v404_v37 = vsel %vm402_vm4, %v397_v21, %v399_v31  ;;  %v407_v38 = vmul.f32 %v1490_v26, %v406_v33  ;;  %v408_v39 = vmul.f32 %v1492_v27, %v405_v32  ;;  %v487_v42 = vpop.permute.xlu2 %486 }
  0xae   : > { %v409_v40 = vmul.f32 %v1494_v29, %v404_v37  ;;  %v410_v41 = vmul.f32 %v1496_v30, %v403_v36 }
  0xaf   : > { %v411_v44 = vpack.c.bf16 %v407_v38, %v407_v38  ;;  %v412_v45 = vpack.c.bf16 %v408_v39, %v408_v39 }
  0xb0   : > { %v413_v47 = vpack.c.bf16 %v409_v40, %v409_v40  ;;  %v414_v48 = vpack.c.bf16 %v410_v41, %v410_v41 }
  0xb1   : > { %v421_v51 = vsel %vm419_vm5, %v411_v44, 0  ;;  %v424_v52 = vsel %vm419_vm5, %v412_v45, 0 }
  0xb2   : > { %439 = vmatpush.bf16.msra.mxu0 %v421_v51  ;;  %452 = vmatpush.bf16.msra.mxu1 %v424_v52  ;;  %v427_v55 = vsel %vm419_vm5, %v413_v47, 0  ;;  %v430_v56 = vsel %vm419_vm5, %v414_v48, 0 }
  0xb3   : > { %465 = vmatpush.bf16.msra.mxu2 %v427_v55  ;;  %478 = vmatpush.bf16.msra.mxu3 %v430_v56 }
  0xb4   : > { %v601_v62 = vpop.permute.xlu0 %600 }
  0xb5   : > { %1142 = vmatmul.msk.bf16.vlgmr.msra.gmra.mxu0 %vm415_vm10, %v380_v57  ;;  %1143 = vmatmul.msk.bf16.vlgmr.msra.gmra.mxu1 %vm415_vm10, %v380_v57  ;;  %v597_v2 = vpop.permute.xlu1 %596  ;;  %v606_v3 = vsel %vm367_vm6, %v601_v62, %v595_v24  ;;  %v603_v4 = vsel %vm367_vm6, %v599_v58, %v601_v62 }
  0xb6   : > { %532 = vmatpush.bf16.msrb.mxu0 %v1520_v49  ;;  %545 = vmatpush.bf16.msrb.mxu1 %v1523_v50  ;;  %v605_v5 = vsel %vm367_vm6, %v595_v24, %v597_v2  ;;  %v610_v6 = vmul.f32 %v1545_v60, %v606_v3  ;;  %v604_v7 = vsel %vm367_vm6, %v597_v2, %v599_v58 }
  0xb7   : > { %1144 = vmatmul.msk.bf16.vlgmr.msra.gmra.mxu2 %vm415_vm10, %v380_v57  ;;  %1145 = vmatmul.msk.bf16.vlgmr.msra.gmra.mxu3 %vm415_vm10, %v380_v57  ;;  %v607_v9 = vmul.f32 %v1554_v63, %v605_v5  ;;  %v608_v10 = vmul.f32 %v1558_v0, %v604_v7  ;;  %v609_v11 = vmul.f32 %v1562_v1, %v603_v4 }
  0xb8   : > { %558 = vmatpush.bf16.msrb.mxu2 %v1541_v59  ;;  %571 = vmatpush.bf16.msrb.mxu3 %v1550_v61  ;;  %v614_v12 = vpack.c.bf16 %v610_v6, %v610_v6 }
  0xb9   : > { %v611_v14 = vpack.c.bf16 %v607_v9, %v607_v9  ;;  %v612_v16 = vpack.c.bf16 %v608_v10, %v608_v10  ;;  %v613_v17 = vpack.c.bf16 %v609_v11, %v609_v11 }
  0xba   : > { %v628_v18 = vsel %vm419_vm5, %v614_v12, 0 }
  0xbb   : > { %v619_v19 = vsel %vm419_vm5, %v611_v14, 0  ;;  %v622_v20 = vsel %vm419_vm5, %v612_v16, 0  ;;  %v625_v21 = vsel %vm419_vm5, %v613_v17, 0 }
  0xbc   : > { %676 = vmatpush.bf16.msra.mxu3 %v628_v18  ;;  %637 = vmatpush.bf16.msra.mxu0 %v619_v19 }
  0xbd   : > { %650 = vmatpush.bf16.msra.mxu1 %v622_v20  ;;  %663 = vmatpush.bf16.msra.mxu2 %v625_v21 }
  0xc5   : > { %1147 = vmatmul.msk.bf16.vlgmr.msrb.gmra.mxu0 %vm415_vm10, %v1146_v22  ;;  %1148 = vmatmul.msk.bf16.vlgmr.msrb.gmra.mxu1 %vm415_vm10, %v1146_v22 }
  0xc7   : > { %1149 = vmatmul.msk.bf16.vlgmr.msrb.gmra.mxu2 %vm415_vm10, %v1146_v22  ;;  %1150 = vmatmul.msk.bf16.vlgmr.msrb.gmra.mxu3 %vm415_vm10, %v1146_v22 }
  0xd5   : > { %1152 = vmatmul.msk.bf16.vlgmr.msra.gmra.mxu0 %vm415_vm10, %v1151_v23  ;;  %1153 = vmatmul.msk.bf16.vlgmr.msra.gmra.mxu1 %vm415_vm10, %v1151_v23 }
  0xd7   : > { %1154 = vmatmul.msk.bf16.vlgmr.msra.gmra.mxu2 %vm415_vm10, %v1151_v23  ;;  %1155 = vmatmul.msk.bf16.vlgmr.msra.gmra.mxu3 %vm415_vm10, %v1151_v23 }
 0x132   : > { %v441_v24 = vpop.f32.mrf.mxu0  ;;  %v454_v25 = vpop.f32.mrf.mxu1 }
 0x133   : > { %v490_v43 = vadd.f32 %v487_v42, %v454_v25  ;;  %v489_v53 = vadd.f32 %v487_v42, %v441_v24 }
 0x13a   : > { %v467_v28 = vpop.f32.mrf.mxu2  ;;  %v480_v31 = vpop.f32.mrf.mxu3 }
 0x13b   : > { %v443_v32 = vpop.f32.mrf.mxu0  ;;  %v456_v33 = vpop.f32.mrf.mxu1  ;;  %v492_v52 = vadd.f32 %v487_v42, %v480_v31  ;;  %v491_v55 = vadd.f32 %v487_v42, %v467_v28 }
 0x142   : > { %v469_v34 = vpop.f32.mrf.mxu2  ;;  %v482_v35 = vpop.f32.mrf.mxu3 }
 0x143   : > { %v534_v36 = vpop.f32.mrf.mxu0  ;;  %v547_v37 = vpop.f32.mrf.mxu1 }
 0x144   : > { %v578_v44 = vadd.f32 %v547_v37, %v490_v43  ;;  %v577_v56 = vadd.f32 %v534_v36, %v489_v53 }
 0x14a   : > { %v560_v38 = vpop.f32.mrf.mxu2  ;;  %v573_v39 = vpop.f32.mrf.mxu3 }
 0x14b   : > { %v536_v40 = vpop.f32.mrf.mxu0  ;;  %v549_v41 = vpop.f32.mrf.mxu1  ;;  %v579_v57 = vadd.f32 %v560_v38, %v491_v55  ;;  %v580_v58 = vadd.f32 %v573_v39, %v492_v52 }
 0x14c   : > { %v691_v41 = vld [vmem:[%s1729_s3] sm:$0xf] }
 0x152   : > { %v562_v45 = vpop.f32.mrf.mxu2  ;;  %v575_v46 = vpop.f32.mrf.mxu3 }
 0x153   : > { %v639_v47 = vpop.f32.mrf.mxu0  ;;  %v652_v48 = vpop.f32.mrf.mxu1 }
 0x154   : > { %v683_v51 = vadd.f32 %v652_v48, %v578_v44  ;;  %v682_v62 = vadd.f32 %v639_v47, %v577_v56 }
 0x156   : > { %v1603_v54 = vmax.f32 %v683_v51, 0.0  ;;  %v686_v10 = vmax.f32 %v682_v62, 0.0 }
 0x158   : > { %694 = vrot.lane.b32.xlu0 %v1603_v54, %s1331_s21  ;;  %v792_v39 = vpack.c.bf16 %v686_v10, %v686_v10 }
 0x15a   : > { %v665_v2 = vpop.f32.mrf.mxu2  ;;  %v678_v3 = vpop.f32.mrf.mxu3  ;;  %v800_v48 = vsel %vm716_vm11, %v792_v39, 0 }
 0x15b   : > { %v684_v4 = vadd.f32 %v665_v2, %v579_v57  ;;  %v685_v5 = vadd.f32 %v678_v3, %v580_v58  ;;  %v654_v6 = vpop.f32.mrf.mxu1  ;;  %v641_v7 = vpop.f32.mrf.mxu0 }
 0x15c   : > { %v1160_v6 = vld [vmem:[%s1729_s3 + $0x4] sm:$0xf] }
 0x15d   : > { %v688_v8 = vmax.f32 %v684_v4, 0.0  ;;  %v689_v9 = vmax.f32 %v685_v5, 0.0 }
 0x15f   : > { %698 = vrot.lane.b32.xlu2 %v689_v9, %s1331_s21  ;;  %696 = vrot.lane.b32.xlu1 %v688_v8, %s1331_s21  ;;  %v794_v21 = vpack.c.bf16 %v688_v8, %v688_v8  ;;  %v795_v32 = vpack.c.bf16 %v689_v9, %v689_v9 }
 0x160   : > { %692 = vrot.lane.b32.xlu0 %v686_v10, %s1331_s21  ;;  %s1052_s21 = sshll.u32 %s296_s28, 4  ;;  %s1053_s21 = int_to_ptr.vmem [resolvable:$true] %s1052_s21 }
 0x161   : > { %v806_v38 = vsel %vm716_vm11, %v794_v21, 0 }
 0x162   : > { %v667_v11 = vpop.f32.mrf.mxu2  ;;  %v680_v12 = vpop.f32.mrf.mxu3 }
 0x167   : > { %873 = vrot.lane.b32.xlu2 %v688_v8, %s1332_s12  ;;  %869 = vrot.lane.b32.xlu1 %v686_v10, %s1332_s12 }
 0x168   : > { %875 = vrot.lane.b32.xlu0 %v689_v9, %s1332_s12 }
 0x16f   : > { %783 = vperm.xlu2 %1231, %v690_v13   ;;  %871 = vrot.lane.b32.xlu1 %v1603_v54, %s1332_s12  ;;  %s1054_s12 = sshll.u32 %s1050_s22, 4  ;;  %s1055_s12 = int_to_ptr.hbm [resolvable:$true] %s1054_s12 }
 0x170   : > { %968 = vperm.xlu0 %1232, %v965_v15   ;;  %s1277_s29 = sshra.s32 %s1055_s12, 4  ;;  %s1278_s29 = int_to_ptr.hbm [resolvable:$true] %s1277_s29 }
 0x171   : > { %s1279_s8 = scalar_lea.hbm %s1278_s29, 16  ;;  %p1284_p0 = scmp.lt.s32.totalorder %s1278_s29, %s1733_s7 }
 0x172   : > { %p1280_p6 = scmp.ne.s32.totalorder %s1278_s29, %s1279_s8  ;;  %p1285_p1 = scmp.lt.s32.totalorder %s1283_s16, %s1279_s8 }
 0x174   : > { %p1281_p9 = pnand %p1280_p6, %p1425_p11  ;;  %p1286_p3 = por %p1285_p1, %p1284_p0 }
 0x176   : > { %p1282_p13 = pneg %p1281_p9 }
 0x178   : > { %p1287_p4 = pnand %p1286_p3, %p1282_p13 }
 0x1b9   : > { %v699_v16 = vpop.permute.xlu2 %698 }
 0x1c1   : > { %v874_v43 = vpop.permute.xlu2 %873 }
 0x1ca   : > { %v695_v14 = vpop.permute.xlu0 %694 }
 0x1d1   : > { %v697_v17 = vpop.permute.xlu1 %696 }
 0x1d2   : > { %v700_v18 = vsel %vm402_vm4, %v697_v17, %v699_v16  ;;  %v701_v19 = vsel %vm402_vm4, %v695_v14, %v697_v17  ;;  %v693_v20 = vpop.permute.xlu0 %692 }
 0x1d3   : > { %v706_v22 = vmul.f32 %v1494_v29, %v701_v19  ;;  %v707_v23 = vmul.f32 %v1496_v30, %v700_v18  ;;  %v702_v24 = vsel %vm402_vm4, %v693_v20, %v695_v14  ;;  %v703_v25 = vsel %vm402_vm4, %v699_v16, %v693_v20 }
 0x1d4   : > { %v704_v28 = vmul.f32 %v1490_v26, %v703_v25  ;;  %v705_v31 = vmul.f32 %v1492_v27, %v702_v24  ;;  %v793_v29 = vpack.c.bf16 %v1603_v54, %v1603_v54  ;;  %v809_v26 = vsel %vm716_vm11, %v795_v32, 0  ;;  %v784_v24 = vpop.permute.xlu2 %783 }
 0x1d5   : > { %v710_v33 = vpack.c.bf16 %v706_v22, %v706_v22  ;;  %v711_v34 = vpack.c.bf16 %v707_v23, %v707_v23 }
 0x1d6   : > { %v708_v35 = vpack.c.bf16 %v704_v28, %v704_v28  ;;  %v709_v36 = vpack.c.bf16 %v705_v31, %v705_v31  ;;  %v803_v45 = vsel %vm716_vm11, %v793_v29, 0 }
 0x1d7   : > { %v724_v30 = vsel %vm716_vm11, %v710_v33, 0  ;;  %v727_v37 = vsel %vm716_vm11, %v711_v34, 0 }
 0x1d8   : > { %762 = vmatpush.bf16.msrb.mxu2 %v724_v30  ;;  %775 = vmatpush.bf16.msrb.mxu3 %v727_v37  ;;  %v718_v27 = vsel %vm716_vm11, %v708_v35, 0  ;;  %v721_v40 = vsel %vm716_vm11, %v709_v36, 0 }
 0x1d9   : > { %v870_v42 = vpop.permute.xlu1 %869  ;;  %736 = vmatpush.bf16.msrb.mxu0 %v718_v27  ;;  %749 = vmatpush.bf16.msrb.mxu1 %v721_v40 }
 0x1da   : > { %v876_v44 = vpop.permute.xlu0 %875 }
 0x1db   : > { %1158 = vmatmul.msk.bf16.vlgmr.msrb.gmra.mxu2 %vm712_vm12, %v691_v41  ;;  %1159 = vmatmul.msk.bf16.vlgmr.msrb.gmra.mxu3 %vm712_vm12, %v691_v41  ;;  %v877_v46 = vsel %vm367_vm6, %v874_v43, %v876_v44  ;;  %v880_v47 = vsel %vm367_vm6, %v876_v44, %v870_v42 }
 0x1dc   : > { %844 = vmatpush.bf16.msra.mxu2 %v806_v38  ;;  %857 = vmatpush.bf16.msra.mxu3 %v809_v26  ;;  %v883_v51 = vmul.f32 %v1562_v1, %v877_v46  ;;  %v884_v52 = vmul.f32 %v1545_v60, %v880_v47 }
 0x1dd   : > { %831 = vmatpush.bf16.msra.mxu1 %v803_v45  ;;  %818 = vmatpush.bf16.msra.mxu0 %v800_v48 }
 0x1de   : > { %1156 = vmatmul.msk.bf16.vlgmr.msrb.gmra.mxu0 %vm712_vm12, %v691_v41  ;;  %1157 = vmatmul.msk.bf16.vlgmr.msrb.gmra.mxu1 %vm712_vm12, %v691_v41  ;;  %v887_v53 = vpack.c.bf16 %v883_v51, %v883_v51  ;;  %v888_v54 = vpack.c.bf16 %v884_v52, %v884_v52 }
 0x1e0   : > { %v899_v55 = vsel %vm716_vm11, %v887_v53, 0  ;;  %v902_v56 = vsel %vm716_vm11, %v888_v54, 0 }
 0x1e1   : > { %v872_v57 = vpop.permute.xlu1 %871  ;;  %937 = vmatpush.bf16.msrb.mxu2 %v899_v55  ;;  %950 = vmatpush.bf16.msrb.mxu3 %v902_v56 }
 0x1e2   : > { %v878_v58 = vsel %vm367_vm6, %v872_v57, %v874_v43  ;;  %v879_v60 = vsel %vm367_vm6, %v870_v42, %v872_v57  ;;  %v969_v27 = vpop.permute.xlu0 %968 }
 0x1e3   : > { %v881_v1 = vmul.f32 %v1554_v63, %v879_v60  ;;  %v882_v62 = vmul.f32 %v1558_v0, %v878_v58  ;;  %v1165_v63 = vld [vmem:[%s1729_s3 + $0x8] sm:$0xf] }
 0x1e5   : > { %v885_v2 = vpack.c.bf16 %v881_v1, %v881_v1  ;;  %v886_v3 = vpack.c.bf16 %v882_v62, %v882_v62 }
 0x1e7   : > { %v893_v4 = vsel %vm716_vm11, %v885_v2, 0  ;;  %v896_v5 = vsel %vm716_vm11, %v886_v3, 0 }
 0x1e8   : > { %911 = vmatpush.bf16.msrb.mxu0 %v893_v4  ;;  %924 = vmatpush.bf16.msrb.mxu1 %v896_v5 }
 0x1eb   : > { %1163 = vmatmul.msk.bf16.vlgmr.msra.gmra.mxu2 %vm712_vm12, %v1160_v6  ;;  %1164 = vmatmul.msk.bf16.vlgmr.msra.gmra.mxu3 %vm712_vm12, %v1160_v6 }
 0x1ec   : > { %1007 = vmatpush.bf16.msra.mxu2 %v1541_v59  ;;  %1020 = vmatpush.bf16.msra.mxu3 %v1550_v61  ;;  %v964_v59 = vld [vmem:[%s1731_s5] sm:$0xf] }
 0x1ee   : > { %1161 = vmatmul.msk.bf16.vlgmr.msra.gmra.mxu0 %vm712_vm12, %v1160_v6  ;;  %1162 = vmatmul.msk.bf16.vlgmr.msra.gmra.mxu1 %vm712_vm12, %v1160_v6 }
 0x1ef   : > { %981 = vmatpush.bf16.msra.mxu0 %v1520_v49  ;;  %994 = vmatpush.bf16.msra.mxu1 %v1523_v50 }
 0x1fb   : > { %1168 = vmatmul.msk.bf16.vlgmr.msrb.gmra.mxu2 %vm712_vm12, %v1165_v63  ;;  %1169 = vmatmul.msk.bf16.vlgmr.msrb.gmra.mxu3 %vm712_vm12, %v1165_v63 }
 0x1fe   : > { %1166 = vmatmul.msk.bf16.vlgmr.msrb.gmra.mxu0 %vm712_vm12, %v1165_v63  ;;  %1167 = vmatmul.msk.bf16.vlgmr.msrb.gmra.mxu1 %vm712_vm12, %v1165_v63 }
 0x20b   : > { %1172 = vmatmul.msk.bf16.vlgmr.msra.gmra.mxu2 %vm415_vm10, %v964_v59  ;;  %1173 = vmatmul.msk.bf16.vlgmr.msra.gmra.mxu3 %vm415_vm10, %v964_v59 }
 0x20e   : > { %1170 = vmatmul.msk.bf16.vlgmr.msra.gmra.mxu0 %vm415_vm10, %v964_v59  ;;  %1171 = vmatmul.msk.bf16.vlgmr.msra.gmra.mxu1 %vm415_vm10, %v964_v59 }
 0x25b   : > { %v738_v49 = vpop.f32.mrf.mxu0  ;;  %v751_v50 = vpop.f32.mrf.mxu1 }
 0x25c   : > { %v786_v31 = vadd.f32 %v784_v24, %v738_v49  ;;  %v787_v32 = vadd.f32 %v784_v24, %v751_v50 }
 0x25e   : > { %v764_v61 = vpop.f32.mrf.mxu2  ;;  %v777_v0 = vpop.f32.mrf.mxu3 }
 0x25f   : > { %v788_v35 = vadd.f32 %v784_v24, %v764_v61  ;;  %v789_v36 = vadd.f32 %v784_v24, %v777_v0 }
 0x263   : > { %v740_v7 = vpop.f32.mrf.mxu0  ;;  %v753_v8 = vpop.f32.mrf.mxu1 }
 0x266   : > { %v766_v9 = vpop.f32.mrf.mxu2  ;;  %v779_v10 = vpop.f32.mrf.mxu3 }
 0x26b   : > { %v820_v11 = vpop.f32.mrf.mxu0  ;;  %v833_v12 = vpop.f32.mrf.mxu1 }
 0x26c   : > { %v863_v33 = vadd.f32 %v820_v11, %v786_v31  ;;  %v864_v34 = vadd.f32 %v833_v12, %v787_v32 }
 0x26e   : > { %v846_v13 = vpop.f32.mrf.mxu2  ;;  %v859_v14 = vpop.f32.mrf.mxu3 }
 0x26f   : > { %v865_v39 = vadd.f32 %v846_v13, %v788_v35  ;;  %v866_v26 = vadd.f32 %v859_v14, %v789_v36 }
 0x273   : > { %v822_v16 = vpop.f32.mrf.mxu0  ;;  %v835_v17 = vpop.f32.mrf.mxu1 }
 0x276   : > { %v848_v18 = vpop.f32.mrf.mxu2  ;;  %v861_v19 = vpop.f32.mrf.mxu3 }
 0x27b   : > { %v913_v20 = vpop.f32.mrf.mxu0  ;;  %v926_v21 = vpop.f32.mrf.mxu1 }
 0x27c   : > { %v956_v37 = vadd.f32 %v913_v20, %v863_v33  ;;  %v957_v38 = vadd.f32 %v926_v21, %v864_v34 }
 0x27e   : > { %v939_v22 = vpop.f32.mrf.mxu2  ;;  %v952_v23 = vpop.f32.mrf.mxu3  ;;  %v960_v44 = vmax.f32 %v956_v37, 0.0  ;;  %v961_v45 = vmax.f32 %v957_v38, 0.0 }
 0x27f   : > { %v958_v40 = vadd.f32 %v939_v22, %v865_v39  ;;  %v959_v41 = vadd.f32 %v952_v23, %v866_v26 }
 0x281   : > { %v962_v52 = vmax.f32 %v958_v40, 0.0  ;;  %v963_v53 = vmax.f32 %v959_v41, 0.0 }
 0x283   : > { %v915_v25 = vpop.f32.mrf.mxu0  ;;  %v928_v28 = vpop.f32.mrf.mxu1 }
 0x286   : > { %v941_v29 = vpop.f32.mrf.mxu2  ;;  %v954_v30 = vpop.f32.mrf.mxu3 }
 0x28b   : > { %v996_v42 = vpop.f32.mrf.mxu1  ;;  %v983_v43 = vpop.f32.mrf.mxu0 }
 0x28c   : > { %v997_v46 = vadd.f32 %v996_v42, %v969_v27  ;;  %v984_v47 = vadd.f32 %v983_v43, %v969_v27 }
 0x28e   : > { %v1027_v48 = vadd.f32 %v997_v46, %v961_v45  ;;  %v1026_v51 = vadd.f32 %v984_v47, %v960_v44  ;;  %v1009_v54 = vpop.f32.mrf.mxu2  ;;  %v1022_v55 = vpop.f32.mrf.mxu3 }
 0x28f   : > { %v1010_v58 = vadd.f32 %v1009_v54, %v969_v27  ;;  %v1023_v60 = vadd.f32 %v1022_v55, %v969_v27 }
 0x290   : > { %v1031_v56 = vmax.f32 %v1027_v48, 0.0  ;;  %v1030_v57 = vmax.f32 %v1026_v51, 0.0 }
 0x291   : > { %v1028_v62 = vadd.f32 %v1010_v58, %v962_v52  ;;  %v1029_v2 = vadd.f32 %v1023_v60, %v963_v53 }
 0x292   : > { %v1034_v1 = vpack.c.bf16 %v1031_v56, %v1030_v57 }
 0x293   : > { %v985_v3 = vpop.f32.mrf.mxu0  ;;  %v998_v4 = vpop.f32.mrf.mxu1  ;;  %v1032_v5 = vmax.f32 %v1028_v62, 0.0  ;;  %v1033_v6 = vmax.f32 %v1029_v2, 0.0 }
 0x294   : > { %1036 = vst [vmem:[%s296_s28] sm:$0xff] %v1034_v1 }
 0x295   : > { %v1035_v15 = vpack.c.bf16 %v1033_v6, %v1032_v5 }
 0x296   : > { %v1011_v63 = vpop.f32.mrf.mxu2  ;;  %v1024_v59 = vpop.f32.mrf.mxu3 }
 0x297   : > { %1037 = vst [vmem:[%s296_s28 + $0x8] sm:$0xff] %v1035_v15 }
 0x298   : > { %1290 = shalt.err (!%p1287_p4)
}
 0x299   : > { %1183 = dma.vmem_to_hbm [thread:$0]  (%p1425_p11), %s1053_s21, 256, %s1055_s12, %s1039_s23  }
 0x29a PF: > { %s1066_s15 = sand.u32 1, %s1317_s24   ;;  %p1746_p7 = scmp.ge.s32.totalorder %s1329_s27, 2 }
 0x29b   : > { %s1067_s18 = scalar_lea.sflag [#allocation4], %s1066_s15 }
 0x29c   : > { %p1190_p5 = pnand %p1746_p7, %p1429_p12 }
 0x29e   : > { %p1191_p8 = pneg %p1190_p5 }
 0x2a0   : > { %1312 = dma.done.wait (%p1191_p8), %s1067_s18, 256  }
 0x2a1   : > { %1314 = vsyncadd (%p1191_p8), %s1067_s18, 4294967040  ;;  %s1747_s19 = sld [smem:[#allocation8_spill]]  ;;  %p20_p10 = scmp.ge.s32.totalorder %s1400_s30, 4  }
 0x2a2   : > { %s1748_s24 = smov %s1321_s25  ;;  %s1749_s25 = smov %s1325_s26 }
 0x2a3   : > { %s1751_s27 = smov %s1400_s30  ;;  %22 = sbr.rel (!%p20_p10) target bundleno = 5 (0x5), region = 100 }
 0x2a7   : > { %s1750_s26 = smov %s1747_s19 }
 0x2a8   :  { %1073 = vsyncpa [#allocation3], 1 }
 0x2a9   :  { %1075 = vsyncpa [#allocation3 + $0x1], 1 }
 0x2aa   :  { %1076 = vsyncpa [#allocation4], 1 }
 0x2ab   :  { %1078 = vsyncpa [#allocation4 + $0x1], 1 }

// kernel: tpu_custom_call.1
= control target key start
LH: loop header
LB: loop body
LE: loop exit
PB: predicated region body
PF: predicated region fallthrough
CT: control target
= control target key end

     0   :  { %12 = vsyncpa [#allocation3], 0  ;;  %s1726_s0 = inlined_call_operand.hbm [shape: f32[4,1024], index: 0, kind: input, shape index: {}]   ;;  %s1727_s1 = inlined_call_operand.vmem [shape: bf16[3,8,4], index: 1, kind: input, shape index: {}]   ;;  %s1728_s2 = inlined_call_operand.vmem [shape: f32[8,1], index: 2, kind: input, shape index: {}]   ;;  %s1729_s3 = inlined_call_operand.vmem [shape: bf16[3,8,8], index: 3, kind: input, shape index: {}]   ;;  %s1730_s4 = inlined_call_operand.vmem [shape: f32[8,1], index: 4, kind: input, shape index: {}]   ;;  %s1731_s5 = inlined_call_operand.vmem [shape: bf16[8,4], index: 5, kind: input, shape index: {}]   ;;  %s1732_s6 = inlined_call_operand.vmem [shape: f32[8,1], index: 6, kind: input, shape index: {}]   ;;  %s1733_s7 = inlined_call_operand.hbm [shape: bf16[8,1024], index: 7, kind: output, shape index: {}]  }
   0x1   :  { %14 = vsyncpa [#allocation3 + $0x1], 0 }
   0x2   :  { %15 = vsyncpa [#allocation4], 0 }
   0x3   :  { %17 = vsyncpa [#allocation4 + $0x1], 0  ;;  %s1375_s24 = smov 0   ;;  %s1377_s25 = smov 0  }
   0x4   :  { %s1379_s26 = smov 0   ;;  %s1381_s27 = smov 0  }
   0x5 LB: > { %s1396_s28 = sadd.s32 4294967295, %s1329_s27   ;;  %s1125_s29 = sadd.s32 4294967294, %s1329_s27   ;;  %s1329_s27 = sphi %s1381_s27, %s1751_s27   ;;  %s1325_s26 = sphi %s1379_s26, %s1750_s26   ;;  %s1321_s25 = sphi %s1377_s25, %s1749_s25   ;;  %s1317_s24 = sphi %s1375_s24, %s1748_s24  }
   0x6   : > { %s1400_s30 = sadd.s32 1, %s1329_s27   ;;  %s30_s8 = sadd.s32 1, %s1325_s26 }
   0x7   : > { %s27_s9 = ssub.s32 %s1329_s27, %s1400_s30  ;;  %p37_p0 = scmp.ne.s32.totalorder %s1325_s26, %s1321_s25 }
   0x8   : > { %p28_p1 = scmp.eq.s32.totalorder %s27_s9, 0  ;;  %p38_p2 = scmp.eq.s32.totalorder %s1329_s27, 0 }
   0x9   : > { %p43_p3 = scmp.ne.s32.totalorder %s1321_s25, %s1317_s24  ;;  %p44_p4 = scmp.eq.s32.totalorder %s1396_s28, 0 }
   0xa   : > { %s1412_s10 = scalar_select %p28_p1, %s1325_s26, %s30_s8  }
   0xb   : > { %p1414_p5 = por %p38_p2, %p37_p0  ;;  %p1418_p6 = por %p44_p4, %p43_p3 }
   0xc   : > { %1734 = sst [smem:[#allocation8_spill]] %s1412_s10  ;;  %p193_p7 = scmp.eq.s32.totalorder %s1396_s28, 1 }
   0xd   : > { %p199_p8 = scmp.eq.s32.totalorder %s1125_s29, 1  ;;  %p1193_p10 = scmp.lt.s32.totalorder %s1329_s27, 2 }
   0xe   : > { %p1425_p11 = por %p193_p7, %p37_p0  ;;  %s237_s15 = sand.u32 1, %s1325_s26  }
   0xf   : > { %p1429_p12 = por %p199_p8, %p43_p3  ;;  %s1179_s16 = sshll.u32 %s1329_s27, 4 }
  0x10   : > { %s1128_s17 = sshll.u32 %s237_s15, 4  ;;  %s246_s20 = scalar_lea.hbm %s1726_s0, %s1179_s16 }
  0x11   : > { %s248_s21 = sshll.u32 %s246_s20, 4  ;;  %s241_s22 = scalar_lea.vmem [#allocation2], %s1128_s17  ;;  %s249_s21 = int_to_ptr.hbm [resolvable:$true] %s248_s21 }
  0x12   : > { %s250_s23 = sshll.u32 %s241_s22, 4  ;;  %p1440_p13 = pnand %p1193_p10, %p1414_p5  ;;  %s251_s23 = int_to_ptr.vmem [resolvable:$true] %s250_s23 }
  0x13   : > { %p1131_p0 = scmp.ge.s32.totalorder %s1329_s27, 1  ;;  %p255_p1 = scmp.lt.s32.totalorder %s1329_s27, 3 }
  0x14   : > { %s238_s8 = scalar_lea.sflag [#allocation3], %s237_s15  ;;  %s1233_s9 = sshra.s32 %s249_s21, 4  ;;  %s1234_s9 = int_to_ptr.hbm [resolvable:$true] %s1233_s9 }
  0x15   : > { %s1235_s10 = scalar_lea.hbm %s1234_s9, 16  ;;  %p1237_p3 = pneg %p1440_p13 }
  0x16   : > { %p1236_p2 = scmp.ne.s32.totalorder %s1234_s9, %s1235_s10  ;;  %s1240_s11 = scalar_lea.hbm %s1726_s0, 32 }
  0x17   : > { %p1241_p5 = scmp.lt.s32.totalorder %s1234_s9, %s1726_s0  ;;  %p1242_p8 = scmp.lt.s32.totalorder %s1240_s11, %s1235_s10 }
  0x18   : > { %p1238_p4 = pnand %p1237_p3, %p1236_p2 }
  0x19   : > { %p1243_p10 = por %p1242_p8, %p1241_p5 }
  0x1a   : > { %p1239_p7 = pneg %p1238_p4 }
  0x1c   : > { %p1244_p9 = pnand %p1243_p10, %p1239_p7 }
  0x1e   : > { %1247 = shalt.err (!%p1244_p9)
}
  0x1f   : > { %1188 = dma.hbm_to_vmem [thread:$0]  (!%p1440_p13), %s249_s21, 256, %s251_s23, %s238_s8  }
  0x20   : > { %p256_p2 = pnand %p1131_p0, %p255_p1 }
  0x21   : > { %s1461_s15 = sand.u32 (!%p256_p2), 1, %s1321_s25  }
  0x22   : > { %259 = sbr.rel (%p256_p2) target bundleno = 666 (0x29a), region = 48  ;;  %s1132_s10 = sshll.u32 (!%p256_p2), %s1461_s15, 4 }
  0x23   : > { %s262_s20 = scalar_lea.sflag (!%p256_p2), [#allocation3], %s1461_s15  ;;  %s265_s22 = scalar_lea.vmem (!%p256_p2), [#allocation2], %s1132_s10 }
  0x27   : > { %1308 = dma.done.wait (%p1418_p6), %s262_s20, 256  }
  0x28   : > { %1310 = vsyncadd (%p1418_p6), %s262_s20, 4294967040  ;;  %v301_v0 = vld [vmem:[%s265_s22 + $0x8] sm:$0xff]  ;;  %v300_v1 = vld [vmem:[%s265_s22] sm:$0xff]  ;;  %s1331_s21 = smov 1   ;;  %s1332_s12 = smov 127   ;;  %v302_v14 = vlaneseq  ;;  %v1333_v25 = vmov 0.0  }
  0x29   : > { %385 = vst [vmem:[#allocation1 + $0x10] ss:$2 sm:$0xff] %v301_v0  ;;  %vm419_vm5 = vcmask 1041408   ;;  %v380_v57 = vld [vmem:[%s1727_s1] sm:$0xf]  ;;  %vm415_vm10 = vcmask 31744  }
  0x2a   : > { %383 = vst [vmem:[#allocation1] ss:$2 sm:$0xff] %v300_v1  ;;  %v1483_v15 = vand.u32 127, %v302_v14  ;;  %vm716_vm11 = vcmask 1043456   ;;  %vm712_vm12 = vcmask 64512   ;;  %s1180_s18 = sshll.u32 %s1396_s28, 4 }
  0x2b   : > { %s1050_s22 = scalar_lea.hbm %s1733_s7, %s1180_s18  ;;  %s296_s28 = scalar_lea.vmem [#allocation5], %s1132_s10 }
  0x2c   : > { %v304_v16 = vadd.s32 128, %v1483_v15  ;;  %v305_v17 = vadd.s32 256, %v1483_v15  ;;  %v306_v18 = vadd.s32 384, %v1483_v15  ;;  %vm355_vm0 = vcmp.ge.s32.totalorder %v1483_v15, 1  ;;  %s1039_s23 = scalar_lea.sflag [#allocation4], %s1461_s15  ;;  %s1283_s16 = scalar_lea.hbm %s1733_s7, 32 }
  0x2d   : > { %vm402_vm4 = vcmp.lt.s32.totalorder %v1483_v15, 1  ;;  %v1490_v26 = vsel %vm355_vm0, 1.0, %v1333_v25  ;;  %vm367_vm6 = vcmp.lt.s32.totalorder %v1483_v15, 127  ;;  %v965_v15 = vld [vmem:[%s1732_s6] sm:$0xff] }
  0x2e   : > { %v318_v20 = vand.u32 127, %v304_v16  ;;  %v325_v22 = vand.u32 127, %v305_v17  ;;  %v332_v23 = vand.u32 127, %v306_v18  ;;  %v1554_v63 = vsel %vm367_vm6, 1.0, %v1333_v25 }
  0x30   : > { %v389_v2 = vld.sshfl [vmem:[#allocation1 + $0x18] sm:$0xff pattern:$0x75316420]  ;;  %v388_v3 = vld.sshfl [vmem:[#allocation1 + $0x10] sm:$0xff pattern:$0x75316420] }
  0x31   : > { %400 = vrot.lane.b32.xlu1 %v389_v2, %s1331_s21  ;;  %v387_v4 = vld.sshfl [vmem:[#allocation1 + $0x8] sm:$0xff pattern:$0x75316420]  ;;  %497 = vst [vmem:[#allocation1 + $0x10] ss:$2 sm:$0xff] %v301_v0  ;;  %vm356_vm1 = vcmp.ge.s32.totalorder %v318_v20, 1 }
  0x32   : > { %396 = vrot.lane.b32.xlu0 %v387_v4, %s1331_s21  ;;  %v386_v5 = vld.sshfl [vmem:[#allocation1] sm:$0xff pattern:$0x75316420]  ;;  %vm357_vm2 = vcmp.ge.s32.totalorder %v325_v22, 1  ;;  %vm358_vm3 = vcmp.ge.s32.totalorder %v332_v23, 1  ;;  %v1492_v27 = vsel %vm356_vm1, 1.0, %v1333_v25 }
  0x33   : > { %495 = vst [vmem:[#allocation1] ss:$2 sm:$0xff] %v300_v1  ;;  %v1494_v29 = vsel %vm357_vm2, 1.0, %v1333_v25  ;;  %v1496_v30 = vsel %vm358_vm3, 1.0, %v1333_v25  ;;  %vm1515_vm7 = vcmp.lt.s32.totalorder %v332_v23, 127  ;;  %vm1527_vm8 = vcmp.lt.s32.totalorder %v318_v20, 127 }
  0x34   : > { %vm1531_vm9 = vcmp.lt.s32.totalorder %v325_v22, 127  ;;  %v1545_v60 = vsel %vm1515_vm7, 1.0, %v1333_v25  ;;  %v1146_v22 = vld [vmem:[%s1727_s1 + $0x4] sm:$0xf]  ;;  %v1151_v23 = vld [vmem:[%s1727_s1 + $0x8] sm:$0xf] }
  0x38   : > { %v1473_v6 = vld.sshfl [vmem:[#allocation1 + $0x10] sm:$0xff pattern:$0x75316420]  ;;  %v1475_v7 = vld.sshfl [vmem:[#allocation1 + $0x18] sm:$0xff pattern:$0x75316420] }
  0x39   : > { %585 = vst [vmem:[#allocation1 + $0x10] ss:$2 sm:$0xff] %v301_v0  ;;  %394 = vrot.lane.b32.xlu1 %v386_v5, %s1331_s21  ;;  %v508_v42 = vpack.c.bf16 %v1473_v6, %v1473_v6  ;;  %v509_v43 = vpack.c.bf16 %v1475_v7, %v1475_v7  ;;  %v1558_v0 = vsel %vm1527_vm8, 1.0, %v1333_v25 }
  0x3a   : > { %398 = vrot.lane.b32.xlu0 %v388_v3, %s1331_s21  ;;  %v498_v8 = vld.sshfl [vmem:[#allocation1] sm:$0xff pattern:$0x75316420]  ;;  %v499_v9 = vld.sshfl [vmem:[#allocation1 + $0x8] sm:$0xff pattern:$0x75316420] }
  0x3b   : > { %583 = vst [vmem:[#allocation1] ss:$2 sm:$0xff] %v300_v1  ;;  %v506_v34 = vpack.c.bf16 %v498_v8, %v498_v8  ;;  %v507_v35 = vpack.c.bf16 %v499_v9, %v499_v9  ;;  %v1541_v59 = vsel %vm419_vm5, %v508_v42, 0  ;;  %v1550_v61 = vsel %vm419_vm5, %v509_v43, 0  ;;  %v379_v8 = vld [vmem:[%s1728_s2] sm:$0xff] }
  0x3c   : > { %v1562_v1 = vsel %vm1531_vm9, 1.0, %v1333_v25 }
  0x3d   : > { %v1520_v49 = vsel %vm419_vm5, %v506_v34, 0  ;;  %v1523_v50 = vsel %vm419_vm5, %v507_v35, 0 }
  0x40   : > { %v589_v10 = vld.sshfl [vmem:[#allocation1 + $0x18] sm:$0xff pattern:$0x75316420]  ;;  %v588_v13 = vld.sshfl [vmem:[#allocation1 + $0x10] sm:$0xff pattern:$0x75316420] }
  0x42   : > { %600 = vrot.lane.b32.xlu0 %v589_v10, %s1332_s12  ;;  %v587_v11 = vld.sshfl [vmem:[#allocation1 + $0x8] sm:$0xff pattern:$0x75316420]  ;;  %v586_v12 = vld.sshfl [vmem:[#allocation1] sm:$0xff pattern:$0x75316420] }
  0x43   : > { %596 = vrot.lane.b32.xlu1 %v587_v11, %s1332_s12  ;;  %594 = vrot.lane.b32.xlu2 %v586_v12, %s1332_s12 }
  0x4b   : > { %598 = vrot.lane.b32.xlu2 %v588_v13, %s1332_s12  ;;  %v1334_v13 = vmov 0  }
  0x4c   : > { %1231 = vset.pattern.permute.xlu2 %v1334_v13  ;;  %1232 = vset.pattern.permute.xlu0 %v1334_v13  ;;  %v690_v13 = vld [vmem:[%s1730_s4] sm:$0xff] }
  0x53   : > { %486 = vperm.xlu2 %1231, %v379_v8  }
  0x9d   : > { %v595_v24 = vpop.permute.xlu2 %594 }
  0xa3   : > { %v401_v19 = vpop.permute.xlu1 %400 }
  0xa4   : > { %v397_v21 = vpop.permute.xlu0 %396 }
  0xa5   : > { %v599_v58 = vpop.permute.xlu2 %598 }
  0xab   : > { %v395_v28 = vpop.permute.xlu1 %394 }
  0xac   : > { %v399_v31 = vpop.permute.xlu0 %398  ;;  %v405_v32 = vsel %vm402_vm4, %v395_v28, %v397_v21  ;;  %v406_v33 = vsel %vm402_vm4, %v401_v19, %v395_v28 }
  0xad   : > { %v403_v36 = vsel %vm402_vm4, %v399_v31, %v401_v19  ;;  %v404_v37 = vsel %vm402_vm4, %v397_v21, %v399_v31  ;;  %v407_v38 = vmul.f32 %v1490_v26, %v406_v33  ;;  %v408_v39 = vmul.f32 %v1492_v27, %v405_v32  ;;  %v487_v42 = vpop.permute.xlu2 %486 }
  0xae   : > { %v409_v40 = vmul.f32 %v1494_v29, %v404_v37  ;;  %v410_v41 = vmul.f32 %v1496_v30, %v403_v36 }
  0xaf   : > { %v411_v44 = vpack.c.bf16 %v407_v38, %v407_v38  ;;  %v412_v45 = vpack.c.bf16 %v408_v39, %v408_v39 }
  0xb0   : > { %v413_v47 = vpack.c.bf16 %v409_v40, %v409_v40  ;;  %v414_v48 = vpack.c.bf16 %v410_v41, %v410_v41 }
  0xb1   : > { %v421_v51 = vsel %vm419_vm5, %v411_v44, 0  ;;  %v424_v52 = vsel %vm419_vm5, %v412_v45, 0 }
  0xb2   : > { %439 = vmatpush.bf16.msra.mxu0 %v421_v51  ;;  %452 = vmatpush.bf16.msra.mxu1 %v424_v52  ;;  %v427_v55 = vsel %vm419_vm5, %v413_v47, 0  ;;  %v430_v56 = vsel %vm419_vm5, %v414_v48, 0 }
  0xb3   : > { %465 = vmatpush.bf16.msra.mxu2 %v427_v55  ;;  %478 = vmatpush.bf16.msra.mxu3 %v430_v56 }
  0xb4   : > { %v601_v62 = vpop.permute.xlu0 %600 }
  0xb5   : > { %1142 = vmatmul.msk.bf16.vlgmr.msra.gmra.mxu0 %vm415_vm10, %v380_v57  ;;  %1143 = vmatmul.msk.bf16.vlgmr.msra.gmra.mxu1 %vm415_vm10, %v380_v57  ;;  %v597_v2 = vpop.permute.xlu1 %596  ;;  %v606_v3 = vsel %vm367_vm6, %v601_v62, %v595_v24  ;;  %v603_v4 = vsel %vm367_vm6, %v599_v58, %v601_v62 }
  0xb6   : > { %532 = vmatpush.bf16.msrb.mxu0 %v1520_v49  ;;  %545 = vmatpush.bf16.msrb.mxu1 %v1523_v50  ;;  %v605_v5 = vsel %vm367_vm6, %v595_v24, %v597_v2  ;;  %v610_v6 = vmul.f32 %v1545_v60, %v606_v3  ;;  %v604_v7 = vsel %vm367_vm6, %v597_v2, %v599_v58 }
  0xb7   : > { %1144 = vmatmul.msk.bf16.vlgmr.msra.gmra.mxu2 %vm415_vm10, %v380_v57  ;;  %1145 = vmatmul.msk.bf16.vlgmr.msra.gmra.mxu3 %vm415_vm10, %v380_v57  ;;  %v607_v9 = vmul.f32 %v1554_v63, %v605_v5  ;;  %v608_v10 = vmul.f32 %v1558_v0, %v604_v7  ;;  %v609_v11 = vmul.f32 %v1562_v1, %v603_v4 }
  0xb8   : > { %558 = vmatpush.bf16.msrb.mxu2 %v1541_v59  ;;  %571 = vmatpush.bf16.msrb.mxu3 %v1550_v61  ;;  %v614_v12 = vpack.c.bf16 %v610_v6, %v610_v6 }
  0xb9   : > { %v611_v14 = vpack.c.bf16 %v607_v9, %v607_v9  ;;  %v612_v16 = vpack.c.bf16 %v608_v10, %v608_v10  ;;  %v613_v17 = vpack.c.bf16 %v609_v11, %v609_v11 }
  0xba   : > { %v628_v18 = vsel %vm419_vm5, %v614_v12, 0 }
  0xbb   : > { %v619_v19 = vsel %vm419_vm5, %v611_v14, 0  ;;  %v622_v20 = vsel %vm419_vm5, %v612_v16, 0  ;;  %v625_v21 = vsel %vm419_vm5, %v613_v17, 0 }
  0xbc   : > { %676 = vmatpush.bf16.msra.mxu3 %v628_v18  ;;  %637 = vmatpush.bf16.msra.mxu0 %v619_v19 }
  0xbd   : > { %650 = vmatpush.bf16.msra.mxu1 %v622_v20  ;;  %663 = vmatpush.bf16.msra.mxu2 %v625_v21 }
  0xc5   : > { %1147 = vmatmul.msk.bf16.vlgmr.msrb.gmra.mxu0 %vm415_vm10, %v1146_v22  ;;  %1148 = vmatmul.msk.bf16.vlgmr.msrb.gmra.mxu1 %vm415_vm10, %v1146_v22 }
  0xc7   : > { %1149 = vmatmul.msk.bf16.vlgmr.msrb.gmra.mxu2 %vm415_vm10, %v1146_v22  ;;  %1150 = vmatmul.msk.bf16.vlgmr.msrb.gmra.mxu3 %vm415_vm10, %v1146_v22 }
  0xd5   : > { %1152 = vmatmul.msk.bf16.vlgmr.msra.gmra.mxu0 %vm415_vm10, %v1151_v23  ;;  %1153 = vmatmul.msk.bf16.vlgmr.msra.gmra.mxu1 %vm415_vm10, %v1151_v23 }
  0xd7   : > { %1154 = vmatmul.msk.bf16.vlgmr.msra.gmra.mxu2 %vm415_vm10, %v1151_v23  ;;  %1155 = vmatmul.msk.bf16.vlgmr.msra.gmra.mxu3 %vm415_vm10, %v1151_v23 }
 0x132   : > { %v441_v24 = vpop.f32.mrf.mxu0  ;;  %v454_v25 = vpop.f32.mrf.mxu1 }
 0x133   : > { %v490_v43 = vadd.f32 %v487_v42, %v454_v25  ;;  %v489_v53 = vadd.f32 %v487_v42, %v441_v24 }
 0x13a   : > { %v467_v28 = vpop.f32.mrf.mxu2  ;;  %v480_v31 = vpop.f32.mrf.mxu3 }
 0x13b   : > { %v443_v32 = vpop.f32.mrf.mxu0  ;;  %v456_v33 = vpop.f32.mrf.mxu1  ;;  %v492_v52 = vadd.f32 %v487_v42, %v480_v31  ;;  %v491_v55 = vadd.f32 %v487_v42, %v467_v28 }
 0x142   : > { %v469_v34 = vpop.f32.mrf.mxu2  ;;  %v482_v35 = vpop.f32.mrf.mxu3 }
 0x143   : > { %v534_v36 = vpop.f32.mrf.mxu0  ;;  %v547_v37 = vpop.f32.mrf.mxu1 }
 0x144   : > { %v578_v44 = vadd.f32 %v547_v37, %v490_v43  ;;  %v577_v56 = vadd.f32 %v534_v36, %v489_v53 }
 0x14a   : > { %v560_v38 = vpop.f32.mrf.mxu2  ;;  %v573_v39 = vpop.f32.mrf.mxu3 }
 0x14b   : > { %v536_v40 = vpop.f32.mrf.mxu0  ;;  %v549_v41 = vpop.f32.mrf.mxu1  ;;  %v579_v57 = vadd.f32 %v560_v38, %v491_v55  ;;  %v580_v58 = vadd.f32 %v573_v39, %v492_v52 }
 0x14c   : > { %v691_v41 = vld [vmem:[%s1729_s3] sm:$0xf] }
 0x152   : > { %v562_v45 = vpop.f32.mrf.mxu2  ;;  %v575_v46 = vpop.f32.mrf.mxu3 }
 0x153   : > { %v639_v47 = vpop.f32.mrf.mxu0  ;;  %v652_v48 = vpop.f32.mrf.mxu1 }
 0x154   : > { %v683_v51 = vadd.f32 %v652_v48, %v578_v44  ;;  %v682_v62 = vadd.f32 %v639_v47, %v577_v56 }
 0x156   : > { %v1603_v54 = vmax.f32 %v683_v51, 0.0  ;;  %v686_v10 = vmax.f32 %v682_v62, 0.0 }
 0x158   : > { %694 = vrot.lane.b32.xlu0 %v1603_v54, %s1331_s21  ;;  %v792_v39 = vpack.c.bf16 %v686_v10, %v686_v10 }
 0x15a   : > { %v665_v2 = vpop.f32.mrf.mxu2  ;;  %v678_v3 = vpop.f32.mrf.mxu3  ;;  %v800_v48 = vsel %vm716_vm11, %v792_v39, 0 }
 0x15b   : > { %v684_v4 = vadd.f32 %v665_v2, %v579_v57  ;;  %v685_v5 = vadd.f32 %v678_v3, %v580_v58  ;;  %v654_v6 = vpop.f32.mrf.mxu1  ;;  %v641_v7 = vpop.f32.mrf.mxu0 }
 0x15c   : > { %v1160_v6 = vld [vmem:[%s1729_s3 + $0x4] sm:$0xf] }
 0x15d   : > { %v688_v8 = vmax.f32 %v684_v4, 0.0  ;;  %v689_v9 = vmax.f32 %v685_v5, 0.0 }
 0x15f   : > { %698 = vrot.lane.b32.xlu2 %v689_v9, %s1331_s21  ;;  %696 = vrot.lane.b32.xlu1 %v688_v8, %s1331_s21  ;;  %v794_v21 = vpack.c.bf16 %v688_v8, %v688_v8  ;;  %v795_v32 = vpack.c.bf16 %v689_v9, %v689_v9 }
 0x160   : > { %692 = vrot.lane.b32.xlu0 %v686_v10, %s1331_s21  ;;  %s1052_s21 = sshll.u32 %s296_s28, 4  ;;  %s1053_s21 = int_to_ptr.vmem [resolvable:$true] %s1052_s21 }
 0x161   : > { %v806_v38 = vsel %vm716_vm11, %v794_v21, 0 }
 0x162   : > { %v667_v11 = vpop.f32.mrf.mxu2  ;;  %v680_v12 = vpop.f32.mrf.mxu3 }
 0x167   : > { %873 = vrot.lane.b32.xlu2 %v688_v8, %s1332_s12  ;;  %869 = vrot.lane.b32.xlu1 %v686_v10, %s1332_s12 }
 0x168   : > { %875 = vrot.lane.b32.xlu0 %v689_v9, %s1332_s12 }
 0x16f   : > { %783 = vperm.xlu2 %1231, %v690_v13   ;;  %871 = vrot.lane.b32.xlu1 %v1603_v54, %s1332_s12  ;;  %s1054_s12 = sshll.u32 %s1050_s22, 4  ;;  %s1055_s12 = int_to_ptr.hbm [resolvable:$true] %s1054_s12 }
 0x170   : > { %968 = vperm.xlu0 %1232, %v965_v15   ;;  %s1277_s29 = sshra.s32 %s1055_s12, 4  ;;  %s1278_s29 = int_to_ptr.hbm [resolvable:$true] %s1277_s29 }
 0x171   : > { %s1279_s8 = scalar_lea.hbm %s1278_s29, 16  ;;  %p1284_p0 = scmp.lt.s32.totalorder %s1278_s29, %s1733_s7 }
 0x172   : > { %p1280_p6 = scmp.ne.s32.totalorder %s1278_s29, %s1279_s8  ;;  %p1285_p1 = scmp.lt.s32.totalorder %s1283_s16, %s1279_s8 }
 0x174   : > { %p1281_p9 = pnand %p1280_p6, %p1425_p11  ;;  %p1286_p3 = por %p1285_p1, %p1284_p0 }
 0x176   : > { %p1282_p13 = pneg %p1281_p9 }
 0x178   : > { %p1287_p4 = pnand %p1286_p3, %p1282_p13 }
 0x1b9   : > { %v699_v16 = vpop.permute.xlu2 %698 }
 0x1c1   : > { %v874_v43 = vpop.permute.xlu2 %873 }
 0x1ca   : > { %v695_v14 = vpop.permute.xlu0 %694 }
 0x1d1   : > { %v697_v17 = vpop.permute.xlu1 %696 }
 0x1d2   : > { %v700_v18 = vsel %vm402_vm4, %v697_v17, %v699_v16  ;;  %v701_v19 = vsel %vm402_vm4, %v695_v14, %v697_v17  ;;  %v693_v20 = vpop.permute.xlu0 %692 }
 0x1d3   : > { %v706_v22 = vmul.f32 %v1494_v29, %v701_v19  ;;  %v707_v23 = vmul.f32 %v1496_v30, %v700_v18  ;;  %v702_v24 = vsel %vm402_vm4, %v693_v20, %v695_v14  ;;  %v703_v25 = vsel %vm402_vm4, %v699_v16, %v693_v20 }
 0x1d4   : > { %v704_v28 = vmul.f32 %v1490_v26, %v703_v25  ;;  %v705_v31 = vmul.f32 %v1492_v27, %v702_v24  ;;  %v793_v29 = vpack.c.bf16 %v1603_v54, %v1603_v54  ;;  %v809_v26 = vsel %vm716_vm11, %v795_v32, 0  ;;  %v784_v24 = vpop.permute.xlu2 %783 }
 0x1d5   : > { %v710_v33 = vpack.c.bf16 %v706_v22, %v706_v22  ;;  %v711_v34 = vpack.c.bf16 %v707_v23, %v707_v23 }
 0x1d6   : > { %v708_v35 = vpack.c.bf16 %v704_v28, %v704_v28  ;;  %v709_v36 = vpack.c.bf16 %v705_v31, %v705_v31  ;;  %v803_v45 = vsel %vm716_vm11, %v793_v29, 0 }
 0x1d7   : > { %v724_v30 = vsel %vm716_vm11, %v710_v33, 0  ;;  %v727_v37 = vsel %vm716_vm11, %v711_v34, 0 }
 0x1d8   : > { %762 = vmatpush.bf16.msrb.mxu2 %v724_v30  ;;  %775 = vmatpush.bf16.msrb.mxu3 %v727_v37  ;;  %v718_v27 = vsel %vm716_vm11, %v708_v35, 0  ;;  %v721_v40 = vsel %vm716_vm11, %v709_v36, 0 }
 0x1d9   : > { %v870_v42 = vpop.permute.xlu1 %869  ;;  %736 = vmatpush.bf16.msrb.mxu0 %v718_v27  ;;  %749 = vmatpush.bf16.msrb.mxu1 %v721_v40 }
 0x1da   : > { %v876_v44 = vpop.permute.xlu0 %875 }
 0x1db   : > { %1158 = vmatmul.msk.bf16.vlgmr.msrb.gmra.mxu2 %vm712_vm12, %v691_v41  ;;  %1159 = vmatmul.msk.bf16.vlgmr.msrb.gmra.mxu3 %vm712_vm12, %v691_v41  ;;  %v877_v46 = vsel %vm367_vm6, %v874_v43, %v876_v44  ;;  %v880_v47 = vsel %vm367_vm6, %v876_v44, %v870_v42 }
 0x1dc   : > { %844 = vmatpush.bf16.msra.mxu2 %v806_v38  ;;  %857 = vmatpush.bf16.msra.mxu3 %v809_v26  ;;  %v883_v51 = vmul.f32 %v1562_v1, %v877_v46  ;;  %v884_v52 = vmul.f32 %v1545_v60, %v880_v47 }
 0x1dd   : > { %831 = vmatpush.bf16.msra.mxu1 %v803_v45  ;;  %818 = vmatpush.bf16.msra.mxu0 %v800_v48 }
 0x1de   : > { %1156 = vmatmul.msk.bf16.vlgmr.msrb.gmra.mxu0 %vm712_vm12, %v691_v41  ;;  %1157 = vmatmul.msk.bf16.vlgmr.msrb.gmra.mxu1 %vm712_vm12, %v691_v41  ;;  %v887_v53 = vpack.c.bf16 %v883_v51, %v883_v51  ;;  %v888_v54 = vpack.c.bf16 %v884_v52, %v884_v52 }
 0x1e0   : > { %v899_v55 = vsel %vm716_vm11, %v887_v53, 0  ;;  %v902_v56 = vsel %vm716_vm11, %v888_v54, 0 }
 0x1e1   : > { %v872_v57 = vpop.permute.xlu1 %871  ;;  %937 = vmatpush.bf16.msrb.mxu2 %v899_v55  ;;  %950 = vmatpush.bf16.msrb.mxu3 %v902_v56 }
 0x1e2   : > { %v878_v58 = vsel %vm367_vm6, %v872_v57, %v874_v43  ;;  %v879_v60 = vsel %vm367_vm6, %v870_v42, %v872_v57  ;;  %v969_v27 = vpop.permute.xlu0 %968 }
 0x1e3   : > { %v881_v1 = vmul.f32 %v1554_v63, %v879_v60  ;;  %v882_v62 = vmul.f32 %v1558_v0, %v878_v58  ;;  %v1165_v63 = vld [vmem:[%s1729_s3 + $0x8] sm:$0xf] }
 0x1e5   : > { %v885_v2 = vpack.c.bf16 %v881_v1, %v881_v1  ;;  %v886_v3 = vpack.c.bf16 %v882_v62, %v882_v62 }
 0x1e7   : > { %v893_v4 = vsel %vm716_vm11, %v885_v2, 0  ;;  %v896_v5 = vsel %vm716_vm11, %v886_v3, 0 }
 0x1e8   : > { %911 = vmatpush.bf16.msrb.mxu0 %v893_v4  ;;  %924 = vmatpush.bf16.msrb.mxu1 %v896_v5 }
 0x1eb   : > { %1163 = vmatmul.msk.bf16.vlgmr.msra.gmra.mxu2 %vm712_vm12, %v1160_v6  ;;  %1164 = vmatmul.msk.bf16.vlgmr.msra.gmra.mxu3 %vm712_vm12, %v1160_v6 }
 0x1ec   : > { %1007 = vmatpush.bf16.msra.mxu2 %v1541_v59  ;;  %1020 = vmatpush.bf16.msra.mxu3 %v1550_v61  ;;  %v964_v59 = vld [vmem:[%s1731_s5] sm:$0xf] }
 0x1ee   : > { %1161 = vmatmul.msk.bf16.vlgmr.msra.gmra.mxu0 %vm712_vm12, %v1160_v6  ;;  %1162 = vmatmul.msk.bf16.vlgmr.msra.gmra.mxu1 %vm712_vm12, %v1160_v6 }
 0x1ef   : > { %981 = vmatpush.bf16.msra.mxu0 %v1520_v49  ;;  %994 = vmatpush.bf16.msra.mxu1 %v1523_v50 }
 0x1fb   : > { %1168 = vmatmul.msk.bf16.vlgmr.msrb.gmra.mxu2 %vm712_vm12, %v1165_v63  ;;  %1169 = vmatmul.msk.bf16.vlgmr.msrb.gmra.mxu3 %vm712_vm12, %v1165_v63 }
 0x1fe   : > { %1166 = vmatmul.msk.bf16.vlgmr.msrb.gmra.mxu0 %vm712_vm12, %v1165_v63  ;;  %1167 = vmatmul.msk.bf16.vlgmr.msrb.gmra.mxu1 %vm712_vm12, %v1165_v63 }
 0x20b   : > { %1172 = vmatmul.msk.bf16.vlgmr.msra.gmra.mxu2 %vm415_vm10, %v964_v59  ;;  %1173 = vmatmul.msk.bf16.vlgmr.msra.gmra.mxu3 %vm415_vm10, %v964_v59 }
 0x20e   : > { %1170 = vmatmul.msk.bf16.vlgmr.msra.gmra.mxu0 %vm415_vm10, %v964_v59  ;;  %1171 = vmatmul.msk.bf16.vlgmr.msra.gmra.mxu1 %vm415_vm10, %v964_v59 }
 0x25b   : > { %v738_v49 = vpop.f32.mrf.mxu0  ;;  %v751_v50 = vpop.f32.mrf.mxu1 }
 0x25c   : > { %v786_v31 = vadd.f32 %v784_v24, %v738_v49  ;;  %v787_v32 = vadd.f32 %v784_v24, %v751_v50 }
 0x25e   : > { %v764_v61 = vpop.f32.mrf.mxu2  ;;  %v777_v0 = vpop.f32.mrf.mxu3 }
 0x25f   : > { %v788_v35 = vadd.f32 %v784_v24, %v764_v61  ;;  %v789_v36 = vadd.f32 %v784_v24, %v777_v0 }
 0x263   : > { %v740_v7 = vpop.f32.mrf.mxu0  ;;  %v753_v8 = vpop.f32.mrf.mxu1 }
 0x266   : > { %v766_v9 = vpop.f32.mrf.mxu2  ;;  %v779_v10 = vpop.f32.mrf.mxu3 }
 0x26b   : > { %v820_v11 = vpop.f32.mrf.mxu0  ;;  %v833_v12 = vpop.f32.mrf.mxu1 }
 0x26c   : > { %v863_v33 = vadd.f32 %v820_v11, %v786_v31  ;;  %v864_v34 = vadd.f32 %v833_v12, %v787_v32 }
 0x26e   : > { %v846_v13 = vpop.f32.mrf.mxu2  ;;  %v859_v14 = vpop.f32.mrf.mxu3 }
 0x26f   : > { %v865_v39 = vadd.f32 %v846_v13, %v788_v35  ;;  %v866_v26 = vadd.f32 %v859_v14, %v789_v36 }
 0x273   : > { %v822_v16 = vpop.f32.mrf.mxu0  ;;  %v835_v17 = vpop.f32.mrf.mxu1 }
 0x276   : > { %v848_v18 = vpop.f32.mrf.mxu2  ;;  %v861_v19 = vpop.f32.mrf.mxu3 }
 0x27b   : > { %v913_v20 = vpop.f32.mrf.mxu0  ;;  %v926_v21 = vpop.f32.mrf.mxu1 }
 0x27c   : > { %v956_v37 = vadd.f32 %v913_v20, %v863_v33  ;;  %v957_v38 = vadd.f32 %v926_v21, %v864_v34 }
 0x27e   : > { %v939_v22 = vpop.f32.mrf.mxu2  ;;  %v952_v23 = vpop.f32.mrf.mxu3  ;;  %v960_v44 = vmax.f32 %v956_v37, 0.0  ;;  %v961_v45 = vmax.f32 %v957_v38, 0.0 }
 0x27f   : > { %v958_v40 = vadd.f32 %v939_v22, %v865_v39  ;;  %v959_v41 = vadd.f32 %v952_v23, %v866_v26 }
 0x281   : > { %v962_v52 = vmax.f32 %v958_v40, 0.0  ;;  %v963_v53 = vmax.f32 %v959_v41, 0.0 }
 0x283   : > { %v915_v25 = vpop.f32.mrf.mxu0  ;;  %v928_v28 = vpop.f32.mrf.mxu1 }
 0x286   : > { %v941_v29 = vpop.f32.mrf.mxu2  ;;  %v954_v30 = vpop.f32.mrf.mxu3 }
 0x28b   : > { %v996_v42 = vpop.f32.mrf.mxu1  ;;  %v983_v43 = vpop.f32.mrf.mxu0 }
 0x28c   : > { %v997_v46 = vadd.f32 %v996_v42, %v969_v27  ;;  %v984_v47 = vadd.f32 %v983_v43, %v969_v27 }
 0x28e   : > { %v1027_v48 = vadd.f32 %v997_v46, %v961_v45  ;;  %v1026_v51 = vadd.f32 %v984_v47, %v960_v44  ;;  %v1009_v54 = vpop.f32.mrf.mxu2  ;;  %v1022_v55 = vpop.f32.mrf.mxu3 }
 0x28f   : > { %v1010_v58 = vadd.f32 %v1009_v54, %v969_v27  ;;  %v1023_v60 = vadd.f32 %v1022_v55, %v969_v27 }
 0x290   : > { %v1031_v56 = vmax.f32 %v1027_v48, 0.0  ;;  %v1030_v57 = vmax.f32 %v1026_v51, 0.0 }
 0x291   : > { %v1028_v62 = vadd.f32 %v1010_v58, %v962_v52  ;;  %v1029_v2 = vadd.f32 %v1023_v60, %v963_v53 }
 0x292   : > { %v1034_v1 = vpack.c.bf16 %v1031_v56, %v1030_v57 }
 0x293   : > { %v985_v3 = vpop.f32.mrf.mxu0  ;;  %v998_v4 = vpop.f32.mrf.mxu1  ;;  %v1032_v5 = vmax.f32 %v1028_v62, 0.0  ;;  %v1033_v6 = vmax.f32 %v1029_v2, 0.0 }
 0x294   : > { %1036 = vst [vmem:[%s296_s28] sm:$0xff] %v1034_v1 }
 0x295   : > { %v1035_v15 = vpack.c.bf16 %v1033_v6, %v1032_v5 }
 0x296   : > { %v1011_v63 = vpop.f32.mrf.mxu2  ;;  %v1024_v59 = vpop.f32.mrf.mxu3 }
 0x297   : > { %1037 = vst [vmem:[%s296_s28 + $0x8] sm:$0xff] %v1035_v15 }
 0x298   : > { %1290 = shalt.err (!%p1287_p4)
}
 0x299   : > { %1183 = dma.vmem_to_hbm [thread:$0]  (%p1425_p11), %s1053_s21, 256, %s1055_s12, %s1039_s23  }
 0x29a PF: > { %s1066_s15 = sand.u32 1, %s1317_s24   ;;  %p1746_p7 = scmp.ge.s32.totalorder %s1329_s27, 2 }
 0x29b   : > { %s1067_s18 = scalar_lea.sflag [#allocation4], %s1066_s15 }
 0x29c   : > { %p1190_p5 = pnand %p1746_p7, %p1429_p12 }
 0x29e   : > { %p1191_p8 = pneg %p1190_p5 }
 0x2a0   : > { %1312 = dma.done.wait (%p1191_p8), %s1067_s18, 256  }
 0x2a1   : > { %1314 = vsyncadd (%p1191_p8), %s1067_s18, 4294967040  ;;  %s1747_s19 = sld [smem:[#allocation8_spill]]  ;;  %p20_p10 = scmp.ge.s32.totalorder %s1400_s30, 4  }
 0x2a2   : > { %s1748_s24 = smov %s1321_s25  ;;  %s1749_s25 = smov %s1325_s26 }
 0x2a3   : > { %s1751_s27 = smov %s1400_s30  ;;  %22 = sbr.rel (!%p20_p10) target bundleno = 5 (0x5), region = 100 }
 0x2a7   : > { %s1750_s26 = smov %s1747_s19 }
 0x2a8   :  { %1073 = vsyncpa [#allocation3], 1 }
 0x2a9   :  { %1075 = vsyncpa [#allocation3 + $0x1], 1 }
 0x2aa   :  { %1076 = vsyncpa [#allocation4], 1 }
 0x2ab   :  { %1078 = vsyncpa [#allocation4 + $0x1], 1 }

</bundles_post_ra>
